<compile_context>
chip_gen: v7x
topology: tpu7x:2x2x1
jax: 0.10.0
libtpu: 0.0.40
codegen_flags: <defaults>
</compile_context>

<pallas_src>
import functools
import math

import jax
import jax.numpy as jnp
from jax import lax
from jax.experimental import pallas as pl
from jax.experimental.pallas import tpu as pltpu


def _round_up(x, m):
    return (x + m - 1) // m * m


def _self_attn_kernel(x_ref, gamma_ref, beta_ref, wqkv_ref, bqkv_ref,
                      wo_ref, bo_ref, o_ref, qkv_scr, pv_scr, *,
                      heads, head_dim, tq, s_pad, s_valid, eps, unroll_heads):
    E = heads * head_dim
    qi = pl.program_id(1)
    n_chunks = s_pad // tq

    # ---- Once per batch element: LayerNorm + fused QKV for the FULL (padded) sequence,
    #      chunked over rows so f32 temporaries stay bounded by (tq, 3E). ----
    def _project_chunk(r0):
        xc = x_ref[0, pl.ds(r0, tq), :].astype(jnp.float32)            # (tq, E)
        mean = jnp.mean(xc, axis=-1, keepdims=True)
        var = jnp.mean(jnp.square(xc - mean), axis=-1, keepdims=True)
        xn = (xc - mean) * lax.rsqrt(var + eps)
        xn = xn * gamma_ref[...].astype(jnp.float32) + beta_ref[...].astype(jnp.float32)
        # Single fused (tq,E) @ (E,3E) bf16 MXU matmul, f32 accumulate. Q part pre-scaled.
        qkv = jnp.dot(xn.astype(jnp.bfloat16), wqkv_ref[...],
                      preferred_element_type=jnp.float32)
        qkv = qkv + bqkv_ref[...]
        qkv_scr[pl.ds(r0, tq), :] = qkv.astype(jnp.bfloat16)

    @pl.when(qi == 0)
    def _():
        if n_chunks == 1:
            _project_chunk(0)
        else:
            @pl.loop(0, n_chunks)
            def _(r):
                _project_chunk(pl.multiple_of(r * tq, tq))

    # ---- Per query tile: attention against the resident full-sequence K/V. ----
    q0 = pl.multiple_of(qi * tq, tq)

    if s_valid < s_pad:  # mask padded keys (static decision)
        kmask = lax.broadcasted_iota(jnp.int32, (1, s_pad), 1) < s_valid
        bias = jnp.where(kmask, 0.0, -1e30).astype(jnp.float32)
    else:
        bias = None

    def one_head(lo):
        # Ref slices only: never materialize the full (S_pad, 3E) slab.
        qh = qkv_scr[pl.ds(q0, tq), pl.ds(lo, head_dim)]               # (tq, D) bf16
        kh = qkv_scr[:, pl.ds(E + lo, head_dim)]                       # (S_pad, D) bf16
        vh = qkv_scr[:, pl.ds(2 * E + lo, head_dim)]                   # (S_pad, D) bf16

        # Scores: contract D of both operands -> no materialized K^T.
        s = lax.dot_general(qh, kh, (((1,), (1,)), ((), ())),
                            preferred_element_type=jnp.float32)        # (tq, S_pad)
        if bias is not None:
            s = s + bias
        m = jnp.max(s, axis=-1, keepdims=True)
        p = jnp.exp(s - m)
        inv_l = pl.reciprocal(jnp.sum(p, axis=-1, keepdims=True), approx=True)

        pv = jnp.dot(p.astype(jnp.bfloat16), vh,
                     preferred_element_type=jnp.float32)                # (tq, D)
        pv = pv * inv_l                                                 # normalize (tq,D), not (tq,S)
        # Stage this head's PV at its column offset; out-proj is one fused matmul below.
        pv_scr[:, pl.ds(lo, head_dim)] = pv.astype(pv_scr.dtype)

    if unroll_heads:
        for h in range(heads):                 # static unroll (only for heads <= 4)
            one_head(h * head_dim)
    else:
        def body(h, carry):
            one_head(pl.multiple_of(h * head_dim, head_dim))
            return carry
        lax.fori_loop(0, heads, body, 0)

    # ---- Single fused output projection: (tq,E) @ (E,E) on the MXU. ----
    out = jnp.dot(pv_scr[...], wo_ref[...],
                  preferred_element_type=jnp.float32) + bo_ref[...]
    o_ref[0] = out.astype(o_ref.dtype)


def self_attention_pallas(x, params, heads, eps=1e-5):
    """x: (B, S, E) float32. params: dict of PyTorch-convention weights."""
    B, S, E = x.shape
    assert E % heads == 0, "embedding_dim must be divisible by heads_num"
    D = E // heads
    scale = 1.0 / math.sqrt(D)

    # Fold 1/sqrt(D) into Wq/bq, fuse QKV, pre-transpose to (in,out), pre-cast to bf16.
    wq_t = (params["wq"] * scale).T
    wqkv = jnp.concatenate([wq_t, params["wk"].T, params["wv"].T], axis=1
                           ).astype(jnp.bfloat16)                              # (E, 3E)
    bqkv = jnp.concatenate([params["bq"] * scale, params["bk"], params["bv"]]
                           ).reshape(1, 3 * E).astype(jnp.float32)
    wo_t = params["wo"].T.astype(jnp.bfloat16)                                 # (E, E)
    bo = params["bo"].reshape(1, E).astype(jnp.float32)
    gamma = params["ln_w"].reshape(1, E).astype(jnp.float32)
    beta = params["ln_b"].reshape(1, E).astype(jnp.float32)

    # ---- Platform-aware tile / VMEM budgeting. ----
    try:
        kind = jax.devices()[0].device_kind.lower()
    except Exception:
        kind = ""
    is_v7 = "v7" in kind
    budget = (56 if is_v7 else 100) * 1024 * 1024      # v7x: 64 MiB/TC; v5e/v6e: 128 MiB
    max_tq = 256 if is_v7 else 512

    def est_bytes(tq_, sp_):
        b = 0
        b += sp_ * 3 * E * 2            # resident QKV scratch (bf16)
        b += tq_ * E * 2                # per-tile PV staging scratch (bf16)
        b += sp_ * E * 2                # x block (bf16, single-buffered)
        b += 4 * E * E * 2              # W_qkv^T (E,3E) + W_o^T (E,E), bf16, single-buffered
        b += 2 * tq_ * E * 4            # double-buffered f32 output block
        b += 3 * tq_ * sp_ * 4          # ONE live head's f32 score/prob temporaries
        b += 5 * tq_ * E * 4            # LN / QKV-chunk f32 temporaries
        return b

    if S <= max_tq:
        tq, S_pad = S, S
    else:
        tq = None
        for t in (512, 256, 128):
            if t > max_tq:
                continue
            sp = _round_up(S, t)
            if est_bytes(t, sp) * 1.35 <= budget:
                tq, S_pad = t, sp
                break
        if tq is None:
            # TODO(synk): resident K/V does not fit — needs a KV-tile axis with online
            # softmax; fall back to the smallest tile and let the compiler spill.
            tq = 128
            S_pad = _round_up(S, tq)
    nq = S_pad // tq

    est = est_bytes(tq, S_pad)
    need = int(est * 1.35)
    vmem_limit = int(min(need, budget)) if need > 24 * 1024 * 1024 else None

    x_in = x.astype(jnp.bfloat16)
    if S_pad != S:
        x_in = jnp.pad(x_in, ((0, 0), (0, S_pad - S), (0, 0)))

    kernel = functools.partial(
        _self_attn_kernel, heads=heads, head_dim=D, tq=tq, s_pad=S_pad,
        s_valid=S, eps=eps, unroll_heads=(heads <= 4))

    def _run(single_buffer):
        def _spec(shape, index_map):
            # Revisited / grid-invariant blocks: single-buffer to halve VMEM footprint.
            if single_buffer and hasattr(pl, "Buffered"):
                try:
                    return pl.BlockSpec(shape, index_map, pipeline_mode=pl.Buffered(1))
                except Exception:
                    pass
            return pl.BlockSpec(shape, index_map)

        grid_spec = pltpu.PrefetchScalarGridSpec(
            num_scalar_prefetch=0,
            grid=(B, nq),
            in_specs=[
                _spec((1, S_pad, E), lambda b, qi: (b, 0, 0)),   # x (full padded sequence)
                _spec((1, E), lambda b, qi: (0, 0)),             # LN gamma
                _spec((1, E), lambda b, qi: (0, 0)),             # LN beta
                _spec((E, 3 * E), lambda b, qi: (0, 0)),         # fused W_qkv^T (bf16)
                _spec((1, 3 * E), lambda b, qi: (0, 0)),         # fused b_qkv
                _spec((E, E), lambda b, qi: (0, 0)),             # W_o^T (bf16)
                _spec((1, E), lambda b, qi: (0, 0)),             # b_o
            ],
            out_specs=pl.BlockSpec((1, tq, E), lambda b, qi: (b, qi, 0)),
            scratch_shapes=[
                pltpu.VMEM((S_pad, 3 * E), jnp.bfloat16),   # resident per-batch QKV
                pltpu.VMEM((tq, E), jnp.bfloat16),          # per-tile per-head PV staging
            ],
        )
        return pl.pallas_call(
            kernel,
            out_shape=jax.ShapeDtypeStruct((B, S_pad, E), x.dtype),
            grid_spec=grid_spec,
            compiler_params=pltpu.CompilerParams(
                # qi axis must be "arbitrary": the QKV scratch filled at qi==0 is reused
                # by later query tiles of the same batch element.
                dimension_semantics=("parallel", "arbitrary"),
                vmem_limit_bytes=vmem_limit,
            ),
        )(x_in, gamma, beta, wqkv, bqkv, wo_t, bo)

    try:
        out = _run(single_buffer=True)
    except Exception:
        # Compatibility guard: retry without pipeline_mode=pl.Buffered(1) single-buffering.
        out = _run(single_buffer=False)

    return out if S_pad == S else out[:, :S, :]


def self_attention_ref(x, params, heads, eps=1e-5):
    """Pure-JAX f32 reference matching torch LayerNorm + MultiheadAttention."""
    B, S, E = x.shape
    D = E // heads
    mean = jnp.mean(x, axis=-1, keepdims=True)
    var = jnp.mean((x - mean) ** 2, axis=-1, keepdims=True)
    xn = (x - mean) / jnp.sqrt(var + eps) * params["ln_w"] + params["ln_b"]
    q = xn @ params["wq"].T + params["bq"]
    k = xn @ params["wk"].T + params["bk"]
    v = xn @ params["wv"].T + params["bv"]
    q = q.reshape(B, S, heads, D).transpose(0, 2, 1, 3)
    k = k.reshape(B, S, heads, D).transpose(0, 2, 1, 3)
    v = v.reshape(B, S, heads, D).transpose(0, 2, 1, 3)
    s = jnp.einsum("bhqd,bhkd->bhqk", q, k) / jnp.sqrt(jnp.float32(D))
    p = jax.nn.softmax(s, axis=-1)
    o = jnp.einsum("bhqk,bhkd->bhqd", p, v).transpose(0, 2, 1, 3).reshape(B, S, E)
    return o @ params["wo"].T + params["bo"]


def init_params(key, embedding_dim):
    E = embedding_dim
    ks = jax.random.split(key, 8)
    s = 0.1
    return {
        "ln_w": jnp.ones((E,), jnp.float32) + s * jax.random.normal(ks[0], (E,)),
        "ln_b": s * jax.random.normal(ks[1], (E,)),
        "wq": s * jax.random.normal(ks[2], (E, E), jnp.float32),
        "wk": s * jax.random.normal(ks[3], (E, E), jnp.float32),
        "wv": s * jax.random.normal(ks[4], (E, E), jnp.float32),
        "bq": s * jax.random.normal(ks[5], (E,), jnp.float32),
        "bk": jnp.zeros((E,), jnp.float32),
        "bv": jnp.zeros((E,), jnp.float32),
        "wo": s * jax.random.normal(ks[6], (E, E), jnp.float32),
        "bo": s * jax.random.normal(ks[7], (E,), jnp.float32),
    }


if __name__ == "__main__":
    B, S, E, H = 2, 8, 32, 4
    key = jax.random.PRNGKey(0)
    kx, kp = jax.random.split(key)
    x = jax.random.normal(kx, (B, S, E), jnp.float32)
    params = init_params(kp, E)

    out = jax.block_until_ready(self_attention_pallas(x, params, heads=H))
    ref = self_attention_ref(x, params, heads=H)
    assert out.shape == (B, S, E)
    err = float(jnp.max(jnp.abs(out - ref)))
    # bf16 MXU operands + bf16 x + approx reciprocal -> relaxed tolerance vs f32 reference.
    assert err < 3e-2, err
    print("KERNEL_OK")
</pallas_src>

<mosaic_0001>
module attributes {stable_mosaic.version = 11 : i64} {
  func.func @_self_attn_kernel(%arg0: i32, %arg1: i32, %arg2: memref<1x8x32xbf16, #tpu.memory_space<vmem>>, %arg3: memref<1x32xf32, #tpu.memory_space<vmem>>, %arg4: memref<1x32xf32, #tpu.memory_space<vmem>>, %arg5: memref<32x96xbf16, #tpu.memory_space<vmem>>, %arg6: memref<1x96xf32, #tpu.memory_space<vmem>>, %arg7: memref<32x32xbf16, #tpu.memory_space<vmem>>, %arg8: memref<1x32xf32, #tpu.memory_space<vmem>>, %arg9: memref<1x8x32xf32, #tpu.memory_space<vmem>>, %arg10: memref<8x96xbf16, #tpu.memory_space<vmem>>, %arg11: memref<8x32xbf16, #tpu.memory_space<vmem>>) attributes {dimension_semantics = [#tpu.dimension_semantics<parallel>, #tpu.dimension_semantics<arbitrary>], iteration_bounds = array<i64: 2, 1>, scalar_prefetch = 0 : i64, scratch_operands = 2 : i64, tpu.core_type = #tpu.core_type<tc>, window_params = [{pipeline_mode = #tpu.pipeline_mode<synchronous>, transform_indices = @transform_0, window_bounds = array<i64: 1, 8, 32>}, {pipeline_mode = #tpu.pipeline_mode<synchronous>, transform_indices = @transform_1, window_bounds = array<i64: 1, 32>}, {pipeline_mode = #tpu.pipeline_mode<synchronous>, transform_indices = @transform_2, window_bounds = array<i64: 1, 32>}, {pipeline_mode = #tpu.pipeline_mode<synchronous>, transform_indices = @transform_3, window_bounds = array<i64: 32, 96>}, {pipeline_mode = #tpu.pipeline_mode<synchronous>, transform_indices = @transform_4, window_bounds = array<i64: 1, 96>}, {pipeline_mode = #tpu.pipeline_mode<synchronous>, transform_indices = @transform_5, window_bounds = array<i64: 32, 32>}, {pipeline_mode = #tpu.pipeline_mode<synchronous>, transform_indices = @transform_6, window_bounds = array<i64: 1, 32>}, {transform_indices = @transform_7, window_bounds = array<i64: 1, 8, 32>}]} {
    %c0_i32 = arith.constant 0 : i32
    %0 = arith.cmpi eq, %arg1, %c0_i32 : i32
    %1 = arith.extui %0 : i1 to i32
    %c0_i32_0 = arith.constant 0 : i32
    %2 = arith.cmpi ne, %1, %c0_i32_0 : i32
    scf.if %2 {
      %c0_42 = arith.constant 0 : index
      %c0_43 = arith.constant 0 : index
      %c0_44 = arith.constant 0 : index
      %90 = vector.load %arg2[%c0_42, %c0_43, %c0_44] : memref<1x8x32xbf16, #tpu.memory_space<vmem>>, vector<1x8x32xbf16>
      %91 = vector.shape_cast %90 : vector<1x8x32xbf16> to vector<8x32xbf16>
      %92 = arith.extf %91 : vector<8x32xbf16> to vector<8x32xf32>
      %cst_45 = arith.constant dense<0.000000e+00> : vector<8xf32>
      %93 = vector.multi_reduction <add>, %92, %cst_45 [1] : vector<8x32xf32> to vector<8xf32>
      %94 = vector.shape_cast %93 : vector<8xf32> to vector<8x1xf32>
      %cst_46 = arith.constant 3.200000e+01 : f32
      %95 = vector.broadcast %cst_46 : f32 to vector<8x1xf32>
      %96 = arith.divf %94, %95 : vector<8x1xf32>
      %97 = vector.broadcast %96 : vector<8x1xf32> to vector<8x32xf32>
      %98 = arith.subf %92, %97 : vector<8x32xf32>
      %99 = arith.mulf %98, %98 : vector<8x32xf32>
      %cst_47 = arith.constant dense<0.000000e+00> : vector<8xf32>
      %100 = vector.multi_reduction <add>, %99, %cst_47 [1] : vector<8x32xf32> to vector<8xf32>
      %101 = vector.shape_cast %100 : vector<8xf32> to vector<8x1xf32>
      %cst_48 = arith.constant 3.200000e+01 : f32
      %102 = vector.broadcast %cst_48 : f32 to vector<8x1xf32>
      %103 = arith.divf %101, %102 : vector<8x1xf32>
      %104 = vector.broadcast %96 : vector<8x1xf32> to vector<8x32xf32>
      %105 = arith.subf %92, %104 : vector<8x32xf32>
      %cst_49 = arith.constant 9.99999974E-6 : f32
      %106 = vector.broadcast %cst_49 : f32 to vector<8x1xf32>
      %107 = arith.addf %103, %106 : vector<8x1xf32>
      %108 = math.rsqrt %107 : vector<8x1xf32>
      %109 = vector.broadcast %108 : vector<8x1xf32> to vector<8x32xf32>
      %110 = arith.mulf %105, %109 : vector<8x32xf32>
      %c0_50 = arith.constant 0 : index
      %c0_51 = arith.constant 0 : index
      %111 = vector.load %arg3[%c0_50, %c0_51] : memref<1x32xf32, #tpu.memory_space<vmem>>, vector<1x32xf32>
      %112 = vector.broadcast %111 : vector<1x32xf32> to vector<8x32xf32>
      %113 = arith.mulf %110, %112 : vector<8x32xf32>
      %c0_52 = arith.constant 0 : index
      %c0_53 = arith.constant 0 : index
      %114 = vector.load %arg4[%c0_52, %c0_53] : memref<1x32xf32, #tpu.memory_space<vmem>>, vector<1x32xf32>
      %115 = vector.broadcast %114 : vector<1x32xf32> to vector<8x32xf32>
      %116 = arith.addf %113, %115 : vector<8x32xf32>
      %117 = arith.truncf %116 : vector<8x32xf32> to vector<8x32xbf16>
      %c0_54 = arith.constant 0 : index
      %c0_55 = arith.constant 0 : index
      %118 = vector.load %arg5[%c0_54, %c0_55] : memref<32x96xbf16, #tpu.memory_space<vmem>>, vector<32x96xbf16>
      %cst_56 = arith.constant dense<0.000000e+00> : vector<8x96xf32>
      %119 = tpu.matmul %117, %118, %cst_56 {dimension_numbers = #tpu.dot_dimension_numbers<[1], [0], [0], [1], [0, 0, 1, 1], [], []>} : vector<8x32xbf16>, vector<32x96xbf16>, vector<8x96xf32> -> vector<8x96xf32>
      %c0_57 = arith.constant 0 : index
      %c0_58 = arith.constant 0 : index
      %120 = vector.load %arg6[%c0_57, %c0_58] : memref<1x96xf32, #tpu.memory_space<vmem>>, vector<1x96xf32>
      %121 = vector.broadcast %120 : vector<1x96xf32> to vector<8x96xf32>
      %122 = arith.addf %119, %121 : vector<8x96xf32>
      %123 = arith.truncf %122 : vector<8x96xf32> to vector<8x96xbf16>
      %c0_59 = arith.constant 0 : index
      %c0_60 = arith.constant 0 : index
      %124 = vector.load %arg10[%c0_59, %c0_60] : memref<8x96xbf16, #tpu.memory_space<vmem>>, vector<8x96xbf16>
      tpu.vector_store %arg10[%c0_59, %c0_60], %123 {strides = array<i32>} : memref<8x96xbf16, #tpu.memory_space<vmem>>, vector<8x96xbf16>,
    } else {
    }
    %c8_i32 = arith.constant 8 : i32
    %3 = arith.muli %arg1, %c8_i32 : i32
    %4 = tpu.assume_multiple %3, 8 : i32
    %5 = arith.index_cast %4 : i32 to index
    %c0 = arith.constant 0 : index
    %6 = vector.load %arg10[%5, %c0] : memref<8x96xbf16, #tpu.memory_space<vmem>>, vector<8x8xbf16>
    %c0_1 = arith.constant 0 : index
    %c32 = arith.constant 32 : index
    %7 = vector.load %arg10[%c0_1, %c32] : memref<8x96xbf16, #tpu.memory_space<vmem>>, vector<8x8xbf16>
    %c0_2 = arith.constant 0 : index
    %c64 = arith.constant 64 : index
    %8 = vector.load %arg10[%c0_2, %c64] : memref<8x96xbf16, #tpu.memory_space<vmem>>, vector<8x8xbf16>
    %cst = arith.constant dense<0.000000e+00> : vector<8x8xf32>
    %9 = tpu.matmul %6, %7, %cst {dimension_numbers = #tpu.dot_dimension_numbers<[1], [1], [0], [0], [0, 0, 1, 0], [], []>} : vector<8x8xbf16>, vector<8x8xbf16>, vector<8x8xf32> -> vector<8x8xf32>
    %cst_3 = arith.constant dense<0xFF800000> : vector<8xf32>
    %10 = vector.multi_reduction <maximumf>, %9, %cst_3 [1] : vector<8x8xf32> to vector<8xf32>
    %11 = vector.shape_cast %10 : vector<8xf32> to vector<8x1xf32>
    %12 = vector.broadcast %11 : vector<8x1xf32> to vector<8x8xf32>
    %13 = arith.subf %9, %12 : vector<8x8xf32>
    %14 = math.exp %13 : vector<8x8xf32>
    %cst_4 = arith.constant dense<0.000000e+00> : vector<8xf32>
    %15 = vector.multi_reduction <add>, %14, %cst_4 [1] : vector<8x8xf32> to vector<8xf32>
    %16 = vector.shape_cast %15 : vector<8xf32> to vector<8x1xf32>
    %17 = tpu.reciprocal %16 {approx = true} : vector<8x1xf32> -> vector<8x1xf32>
    %18 = arith.truncf %14 : vector<8x8xf32> to vector<8x8xbf16>
    %cst_5 = arith.constant dense<0.000000e+00> : vector<8x8xf32>
    %19 = tpu.matmul %18, %8, %cst_5 {dimension_numbers = #tpu.dot_dimension_numbers<[1], [0], [0], [1], [0, 0, 1, 1], [], []>} : vector<8x8xbf16>, vector<8x8xbf16>, vector<8x8xf32> -> vector<8x8xf32>
    %20 = vector.broadcast %17 : vector<8x1xf32> to vector<8x8xf32>
    %21 = arith.mulf %19, %20 : vector<8x8xf32>
    %22 = arith.truncf %21 : vector<8x8xf32> to vector<8x8xbf16>
    %c0_6 = arith.constant 0 : index
    %c0_7 = arith.constant 0 : index
    %23 = vector.load %arg11[%c0_6, %c0_7] : memref<8x32xbf16, #tpu.memory_space<vmem>>, vector<8x8xbf16>
    tpu.vector_store %arg11[%c0_6, %c0_7], %22 {strides = array<i32>} : memref<8x32xbf16, #tpu.memory_space<vmem>>, vector<8x8xbf16>,
    %24 = arith.index_cast %4 : i32 to index
    %c8 = arith.constant 8 : index
    %25 = vector.load %arg10[%24, %c8] : memref<8x96xbf16, #tpu.memory_space<vmem>>, vector<8x8xbf16>
    %c0_8 = arith.constant 0 : index
    %c40 = arith.constant 40 : index
    %26 = vector.load %arg10[%c0_8, %c40] : memref<8x96xbf16, #tpu.memory_space<vmem>>, vector<8x8xbf16>
    %c0_9 = arith.constant 0 : index
    %c72 = arith.constant 72 : index
    %27 = vector.load %arg10[%c0_9, %c72] : memref<8x96xbf16, #tpu.memory_space<vmem>>, vector<8x8xbf16>
    %cst_10 = arith.constant dense<0.000000e+00> : vector<8x8xf32>
    %28 = tpu.matmul %25, %26, %cst_10 {dimension_numbers = #tpu.dot_dimension_numbers<[1], [1], [0], [0], [0, 0, 1, 0], [], []>} : vector<8x8xbf16>, vector<8x8xbf16>, vector<8x8xf32> -> vector<8x8xf32>
    %cst_11 = arith.constant dense<0xFF800000> : vector<8xf32>
    %29 = vector.multi_reduction <maximumf>, %28, %cst_11 [1] : vector<8x8xf32> to vector<8xf32>
    %30 = vector.shape_cast %29 : vector<8xf32> to vector<8x1xf32>
    %31 = vector.broadcast %30 : vector<8x1xf32> to vector<8x8xf32>
    %32 = arith.subf %28, %31 : vector<8x8xf32>
    %33 = math.exp %32 : vector<8x8xf32>
    %cst_12 = arith.constant dense<0.000000e+00> : vector<8xf32>
    %34 = vector.multi_reduction <add>, %33, %cst_12 [1] : vector<8x8xf32> to vector<8xf32>
    %35 = vector.shape_cast %34 : vector<8xf32> to vector<8x1xf32>
    %36 = tpu.reciprocal %35 {approx = true} : vector<8x1xf32> -> vector<8x1xf32>
    %37 = arith.truncf %33 : vector<8x8xf32> to vector<8x8xbf16>
    %cst_13 = arith.constant dense<0.000000e+00> : vector<8x8xf32>
    %38 = tpu.matmul %37, %27, %cst_13 {dimension_numbers = #tpu.dot_dimension_numbers<[1], [0], [0], [1], [0, 0, 1, 1], [], []>} : vector<8x8xbf16>, vector<8x8xbf16>, vector<8x8xf32> -> vector<8x8xf32>
    %39 = vector.broadcast %36 : vector<8x1xf32> to vector<8x8xf32>
    %40 = arith.mulf %38, %39 : vector<8x8xf32>
    %41 = arith.truncf %40 : vector<8x8xf32> to vector<8x8xbf16>
    %c0_14 = arith.constant 0 : index
    %c8_15 = arith.constant 8 : index
    %42 = vector.load %arg11[%c0_14, %c8_15] : memref<8x32xbf16, #tpu.memory_space<vmem>>, vector<8x8xbf16>
    tpu.vector_store %arg11[%c0_14, %c8_15], %41 {strides = array<i32>} : memref<8x32xbf16, #tpu.memory_space<vmem>>, vector<8x8xbf16>,
    %43 = arith.index_cast %4 : i32 to index
    %c16 = arith.constant 16 : index
    %44 = vector.load %arg10[%43, %c16] : memref<8x96xbf16, #tpu.memory_space<vmem>>, vector<8x8xbf16>
    %c0_16 = arith.constant 0 : index
    %c48 = arith.constant 48 : index
    %45 = vector.load %arg10[%c0_16, %c48] : memref<8x96xbf16, #tpu.memory_space<vmem>>, vector<8x8xbf16>
    %c0_17 = arith.constant 0 : index
    %c80 = arith.constant 80 : index
    %46 = vector.load %arg10[%c0_17, %c80] : memref<8x96xbf16, #tpu.memory_space<vmem>>, vector<8x8xbf16>
    %cst_18 = arith.constant dense<0.000000e+00> : vector<8x8xf32>
    %47 = tpu.matmul %44, %45, %cst_18 {dimension_numbers = #tpu.dot_dimension_numbers<[1], [1], [0], [0], [0, 0, 1, 0], [], []>} : vector<8x8xbf16>, vector<8x8xbf16>, vector<8x8xf32> -> vector<8x8xf32>
    %cst_19 = arith.constant dense<0xFF800000> : vector<8xf32>
    %48 = vector.multi_reduction <maximumf>, %47, %cst_19 [1] : vector<8x8xf32> to vector<8xf32>
    %49 = vector.shape_cast %48 : vector<8xf32> to vector<8x1xf32>
    %50 = vector.broadcast %49 : vector<8x1xf32> to vector<8x8xf32>
    %51 = arith.subf %47, %50 : vector<8x8xf32>
    %52 = math.exp %51 : vector<8x8xf32>
    %cst_20 = arith.constant dense<0.000000e+00> : vector<8xf32>
    %53 = vector.multi_reduction <add>, %52, %cst_20 [1] : vector<8x8xf32> to vector<8xf32>
    %54 = vector.shape_cast %53 : vector<8xf32> to vector<8x1xf32>
    %55 = tpu.reciprocal %54 {approx = true} : vector<8x1xf32> -> vector<8x1xf32>
    %56 = arith.truncf %52 : vector<8x8xf32> to vector<8x8xbf16>
    %cst_21 = arith.constant dense<0.000000e+00> : vector<8x8xf32>
    %57 = tpu.matmul %56, %46, %cst_21 {dimension_numbers = #tpu.dot_dimension_numbers<[1], [0], [0], [1], [0, 0, 1, 1], [], []>} : vector<8x8xbf16>, vector<8x8xbf16>, vector<8x8xf32> -> vector<8x8xf32>
    %58 = vector.broadcast %55 : vector<8x1xf32> to vector<8x8xf32>
    %59 = arith.mulf %57, %58 : vector<8x8xf32>
    %60 = arith.truncf %59 : vector<8x8xf32> to vector<8x8xbf16>
    %c0_22 = arith.constant 0 : index
    %c16_23 = arith.constant 16 : index
    %61 = vector.load %arg11[%c0_22, %c16_23] : memref<8x32xbf16, #tpu.memory_space<vmem>>, vector<8x8xbf16>
    tpu.vector_store %arg11[%c0_22, %c16_23], %60 {strides = array<i32>} : memref<8x32xbf16, #tpu.memory_space<vmem>>, vector<8x8xbf16>,
    %62 = arith.index_cast %4 : i32 to index
    %c24 = arith.constant 24 : index
    %63 = vector.load %arg10[%62, %c24] : memref<8x96xbf16, #tpu.memory_space<vmem>>, vector<8x8xbf16>
    %c0_24 = arith.constant 0 : index
    %c56 = arith.constant 56 : index
    %64 = vector.load %arg10[%c0_24, %c56] : memref<8x96xbf16, #tpu.memory_space<vmem>>, vector<8x8xbf16>
    %c0_25 = arith.constant 0 : index
    %c88 = arith.constant 88 : index
    %65 = vector.load %arg10[%c0_25, %c88] : memref<8x96xbf16, #tpu.memory_space<vmem>>, vector<8x8xbf16>
    %cst_26 = arith.constant dense<0.000000e+00> : vector<8x8xf32>
    %66 = tpu.matmul %63, %64, %cst_26 {dimension_numbers = #tpu.dot_dimension_numbers<[1], [1], [0], [0], [0, 0, 1, 0], [], []>} : vector<8x8xbf16>, vector<8x8xbf16>, vector<8x8xf32> -> vector<8x8xf32>
    %cst_27 = arith.constant dense<0xFF800000> : vector<8xf32>
    %67 = vector.multi_reduction <maximumf>, %66, %cst_27 [1] : vector<8x8xf32> to vector<8xf32>
    %68 = vector.shape_cast %67 : vector<8xf32> to vector<8x1xf32>
    %69 = vector.broadcast %68 : vector<8x1xf32> to vector<8x8xf32>
    %70 = arith.subf %66, %69 : vector<8x8xf32>
    %71 = math.exp %70 : vector<8x8xf32>
    %cst_28 = arith.constant dense<0.000000e+00> : vector<8xf32>
    %72 = vector.multi_reduction <add>, %71, %cst_28 [1] : vector<8x8xf32> to vector<8xf32>
    %73 = vector.shape_cast %72 : vector<8xf32> to vector<8x1xf32>
    %74 = tpu.reciprocal %73 {approx = true} : vector<8x1xf32> -> vector<8x1xf32>
    %75 = arith.truncf %71 : vector<8x8xf32> to vector<8x8xbf16>
    %cst_29 = arith.constant dense<0.000000e+00> : vector<8x8xf32>
    %76 = tpu.matmul %75, %65, %cst_29 {dimension_numbers = #tpu.dot_dimension_numbers<[1], [0], [0], [1], [0, 0, 1, 1], [], []>} : vector<8x8xbf16>, vector<8x8xbf16>, vector<8x8xf32> -> vector<8x8xf32>
    %77 = vector.broadcast %74 : vector<8x1xf32> to vector<8x8xf32>
    %78 = arith.mulf %76, %77 : vector<8x8xf32>
    %79 = arith.truncf %78 : vector<8x8xf32> to vector<8x8xbf16>
    %c0_30 = arith.constant 0 : index
    %c24_31 = arith.constant 24 : index
    %80 = vector.load %arg11[%c0_30, %c24_31] : memref<8x32xbf16, #tpu.memory_space<vmem>>, vector<8x8xbf16>
    tpu.vector_store %arg11[%c0_30, %c24_31], %79 {strides = array<i32>} : memref<8x32xbf16, #tpu.memory_space<vmem>>, vector<8x8xbf16>,
    %c0_32 = arith.constant 0 : index
    %c0_33 = arith.constant 0 : index
    %81 = vector.load %arg11[%c0_32, %c0_33] : memref<8x32xbf16, #tpu.memory_space<vmem>>, vector<8x32xbf16>
    %c0_34 = arith.constant 0 : index
    %c0_35 = arith.constant 0 : index
    %82 = vector.load %arg7[%c0_34, %c0_35] : memref<32x32xbf16, #tpu.memory_space<vmem>>, vector<32x32xbf16>
    %cst_36 = arith.constant dense<0.000000e+00> : vector<8x32xf32>
    %83 = tpu.matmul %81, %82, %cst_36 {dimension_numbers = #tpu.dot_dimension_numbers<[1], [0], [0], [1], [0, 0, 1, 1], [], []>} : vector<8x32xbf16>, vector<32x32xbf16>, vector<8x32xf32> -> vector<8x32xf32>
    %c0_37 = arith.constant 0 : index
    %c0_38 = arith.constant 0 : index
    %84 = vector.load %arg8[%c0_37, %c0_38] : memref<1x32xf32, #tpu.memory_space<vmem>>, vector<1x32xf32>
    %85 = vector.broadcast %84 : vector<1x32xf32> to vector<8x32xf32>
    %86 = arith.addf %83, %85 : vector<8x32xf32>
    %c0_39 = arith.constant 0 : index
    %c0_40 = arith.constant 0 : index
    %c0_41 = arith.constant 0 : index
    %87 = vector.load %arg9[%c0_39, %c0_40, %c0_41] : memref<1x8x32xf32, #tpu.memory_space<vmem>>, vector<1x8x32xf32>
    %88 = vector.shape_cast %87 : vector<1x8x32xf32> to vector<8x32xf32>
    %89 = vector.shape_cast %86 : vector<8x32xf32> to vector<1x8x32xf32>
    tpu.vector_store %arg9[%c0_39, %c0_40, %c0_41], %89 {strides = array<i32>} : memref<1x8x32xf32, #tpu.memory_space<vmem>>, vector<1x8x32xf32>,
    return
  }
  func.func @transform_0(%arg0: i32, %arg1: i32) -> (i32, i32, i32) {
    %c0_i32 = arith.constant 0 : i32
    %c0_i32_0 = arith.constant 0 : i32
    %c0_i32_1 = arith.constant 0 : i32
    return %arg0, %c0_i32, %c0_i32_0 : i32, i32, i32
  }
  func.func @transform_1(%arg0: i32, %arg1: i32) -> (i32, i32) {
    %c0_i32 = arith.constant 0 : i32
    %c0_i32_0 = arith.constant 0 : i32
    %c0_i32_1 = arith.constant 0 : i32
    return %c0_i32, %c0_i32_0 : i32, i32
  }
  func.func @transform_2(%arg0: i32, %arg1: i32) -> (i32, i32) {
    %c0_i32 = arith.constant 0 : i32
    %c0_i32_0 = arith.constant 0 : i32
    %c0_i32_1 = arith.constant 0 : i32
    return %c0_i32, %c0_i32_0 : i32, i32
  }
  func.func @transform_3(%arg0: i32, %arg1: i32) -> (i32, i32) {
    %c0_i32 = arith.constant 0 : i32
    %c0_i32_0 = arith.constant 0 : i32
    %c0_i32_1 = arith.constant 0 : i32
    return %c0_i32, %c0_i32_0 : i32, i32
  }
  func.func @transform_4(%arg0: i32, %arg1: i32) -> (i32, i32) {
    %c0_i32 = arith.constant 0 : i32
    %c0_i32_0 = arith.constant 0 : i32
    %c0_i32_1 = arith.constant 0 : i32
    return %c0_i32, %c0_i32_0 : i32, i32
  }
  func.func @transform_5(%arg0: i32, %arg1: i32) -> (i32, i32) {
    %c0_i32 = arith.constant 0 : i32
    %c0_i32_0 = arith.constant 0 : i32
    %c0_i32_1 = arith.constant 0 : i32
    return %c0_i32, %c0_i32_0 : i32, i32
  }
  func.func @transform_6(%arg0: i32, %arg1: i32) -> (i32, i32) {
    %c0_i32 = arith.constant 0 : i32
    %c0_i32_0 = arith.constant 0 : i32
    %c0_i32_1 = arith.constant 0 : i32
    return %c0_i32, %c0_i32_0 : i32, i32
  }
  func.func @transform_7(%arg0: i32, %arg1: i32) -> (i32, i32, i32) {
    %c0_i32 = arith.constant 0 : i32
    %c0_i32_0 = arith.constant 0 : i32
    return %arg0, %arg1, %c0_i32 : i32, i32, i32
  }
}

module attributes {stable_mosaic.version = 11 : i64} {
  func.func @_self_attn_kernel(%arg0: i32, %arg1: i32, %arg2: memref<1x8x32xbf16, #tpu.memory_space<vmem>>, %arg3: memref<1x32xf32, #tpu.memory_space<vmem>>, %arg4: memref<1x32xf32, #tpu.memory_space<vmem>>, %arg5: memref<32x96xbf16, #tpu.memory_space<vmem>>, %arg6: memref<1x96xf32, #tpu.memory_space<vmem>>, %arg7: memref<32x32xbf16, #tpu.memory_space<vmem>>, %arg8: memref<1x32xf32, #tpu.memory_space<vmem>>, %arg9: memref<1x8x32xf32, #tpu.memory_space<vmem>>, %arg10: memref<8x96xbf16, #tpu.memory_space<vmem>>, %arg11: memref<8x32xbf16, #tpu.memory_space<vmem>>) attributes {dimension_semantics = [#tpu.dimension_semantics<parallel>, #tpu.dimension_semantics<arbitrary>], iteration_bounds = array<i64: 2, 1>, scalar_prefetch = 0 : i64, scratch_operands = 2 : i64, tpu.core_type = #tpu.core_type<tc>, window_params = [{transform_indices = @transform_0, window_bounds = array<i64: 1, 8, 32>}, {pipeline_mode = #tpu.pipeline_mode<synchronous>, transform_indices = @transform_1, window_bounds = array<i64: 1, 32>}, {pipeline_mode = #tpu.pipeline_mode<synchronous>, transform_indices = @transform_2, window_bounds = array<i64: 1, 32>}, {pipeline_mode = #tpu.pipeline_mode<synchronous>, transform_indices = @transform_3, window_bounds = array<i64: 32, 96>}, {pipeline_mode = #tpu.pipeline_mode<synchronous>, transform_indices = @transform_4, window_bounds = array<i64: 1, 96>}, {pipeline_mode = #tpu.pipeline_mode<synchronous>, transform_indices = @transform_5, window_bounds = array<i64: 32, 32>}, {pipeline_mode = #tpu.pipeline_mode<synchronous>, transform_indices = @transform_6, window_bounds = array<i64: 1, 32>}, {transform_indices = @transform_7, window_bounds = array<i64: 1, 8, 32>}]} {
    %c0_i32 = arith.constant 0 : i32
    %0 = arith.cmpi eq, %arg1, %c0_i32 : i32
    %1 = arith.extui %0 : i1 to i32
    %c0_i32_0 = arith.constant 0 : i32
    %2 = arith.cmpi ne, %1, %c0_i32_0 : i32
    scf.if %2 {
      %c0_42 = arith.constant 0 : index
      %c0_43 = arith.constant 0 : index
      %c0_44 = arith.constant 0 : index
      %90 = vector.load %arg2[%c0_42, %c0_43, %c0_44] : memref<1x8x32xbf16, #tpu.memory_space<vmem>>, vector<1x8x32xbf16>
      %91 = vector.shape_cast %90 : vector<1x8x32xbf16> to vector<8x32xbf16>
      %92 = arith.extf %91 : vector<8x32xbf16> to vector<8x32xf32>
      %cst_45 = arith.constant dense<0.000000e+00> : vector<8xf32>
      %93 = vector.multi_reduction <add>, %92, %cst_45 [1] : vector<8x32xf32> to vector<8xf32>
      %94 = vector.shape_cast %93 : vector<8xf32> to vector<8x1xf32>
      %cst_46 = arith.constant 3.200000e+01 : f32
      %95 = vector.broadcast %cst_46 : f32 to vector<8x1xf32>
      %96 = arith.divf %94, %95 : vector<8x1xf32>
      %97 = vector.broadcast %96 : vector<8x1xf32> to vector<8x32xf32>
      %98 = arith.subf %92, %97 : vector<8x32xf32>
      %99 = arith.mulf %98, %98 : vector<8x32xf32>
      %cst_47 = arith.constant dense<0.000000e+00> : vector<8xf32>
      %100 = vector.multi_reduction <add>, %99, %cst_47 [1] : vector<8x32xf32> to vector<8xf32>
      %101 = vector.shape_cast %100 : vector<8xf32> to vector<8x1xf32>
      %cst_48 = arith.constant 3.200000e+01 : f32
      %102 = vector.broadcast %cst_48 : f32 to vector<8x1xf32>
      %103 = arith.divf %101, %102 : vector<8x1xf32>
      %104 = vector.broadcast %96 : vector<8x1xf32> to vector<8x32xf32>
      %105 = arith.subf %92, %104 : vector<8x32xf32>
      %cst_49 = arith.constant 9.99999974E-6 : f32
      %106 = vector.broadcast %cst_49 : f32 to vector<8x1xf32>
      %107 = arith.addf %103, %106 : vector<8x1xf32>
      %108 = math.rsqrt %107 : vector<8x1xf32>
      %109 = vector.broadcast %108 : vector<8x1xf32> to vector<8x32xf32>
      %110 = arith.mulf %105, %109 : vector<8x32xf32>
      %c0_50 = arith.constant 0 : index
      %c0_51 = arith.constant 0 : index
      %111 = vector.load %arg3[%c0_50, %c0_51] : memref<1x32xf32, #tpu.memory_space<vmem>>, vector<1x32xf32>
      %112 = vector.broadcast %111 : vector<1x32xf32> to vector<8x32xf32>
      %113 = arith.mulf %110, %112 : vector<8x32xf32>
      %c0_52 = arith.constant 0 : index
      %c0_53 = arith.constant 0 : index
      %114 = vector.load %arg4[%c0_52, %c0_53] : memref<1x32xf32, #tpu.memory_space<vmem>>, vector<1x32xf32>
      %115 = vector.broadcast %114 : vector<1x32xf32> to vector<8x32xf32>
      %116 = arith.addf %113, %115 : vector<8x32xf32>
      %117 = arith.truncf %116 : vector<8x32xf32> to vector<8x32xbf16>
      %c0_54 = arith.constant 0 : index
      %c0_55 = arith.constant 0 : index
      %118 = vector.load %arg5[%c0_54, %c0_55] : memref<32x96xbf16, #tpu.memory_space<vmem>>, vector<32x96xbf16>
      %cst_56 = arith.constant dense<0.000000e+00> : vector<8x96xf32>
      %119 = tpu.matmul %117, %118, %cst_56 {dimension_numbers = #tpu.dot_dimension_numbers<[1], [0], [0], [1], [0, 0, 1, 1], [], []>} : vector<8x32xbf16>, vector<32x96xbf16>, vector<8x96xf32> -> vector<8x96xf32>
      %c0_57 = arith.constant 0 : index
      %c0_58 = arith.constant 0 : index
      %120 = vector.load %arg6[%c0_57, %c0_58] : memref<1x96xf32, #tpu.memory_space<vmem>>, vector<1x96xf32>
      %121 = vector.broadcast %120 : vector<1x96xf32> to vector<8x96xf32>
      %122 = arith.addf %119, %121 : vector<8x96xf32>
      %123 = arith.truncf %122 : vector<8x96xf32> to vector<8x96xbf16>
      %c0_59 = arith.constant 0 : index
      %c0_60 = arith.constant 0 : index
      %124 = vector.load %arg10[%c0_59, %c0_60] : memref<8x96xbf16, #tpu.memory_space<vmem>>, vector<8x96xbf16>
      tpu.vector_store %arg10[%c0_59, %c0_60], %123 {strides = array<i32>} : memref<8x96xbf16, #tpu.memory_space<vmem>>, vector<8x96xbf16>,
    } else {
    }
    %c8_i32 = arith.constant 8 : i32
    %3 = arith.muli %arg1, %c8_i32 : i32
    %4 = tpu.assume_multiple %3, 8 : i32
    %5 = arith.index_cast %4 : i32 to index
    %c0 = arith.constant 0 : index
    %6 = vector.load %arg10[%5, %c0] : memref<8x96xbf16, #tpu.memory_space<vmem>>, vector<8x8xbf16>
    %c0_1 = arith.constant 0 : index
    %c32 = arith.constant 32 : index
    %7 = vector.load %arg10[%c0_1, %c32] : memref<8x96xbf16, #tpu.memory_space<vmem>>, vector<8x8xbf16>
    %c0_2 = arith.constant 0 : index
    %c64 = arith.constant 64 : index
    %8 = vector.load %arg10[%c0_2, %c64] : memref<8x96xbf16, #tpu.memory_space<vmem>>, vector<8x8xbf16>
    %cst = arith.constant dense<0.000000e+00> : vector<8x8xf32>
    %9 = tpu.matmul %6, %7, %cst {dimension_numbers = #tpu.dot_dimension_numbers<[1], [1], [0], [0], [0, 0, 1, 0], [], []>} : vector<8x8xbf16>, vector<8x8xbf16>, vector<8x8xf32> -> vector<8x8xf32>
    %cst_3 = arith.constant dense<0xFF800000> : vector<8xf32>
    %10 = vector.multi_reduction <maximumf>, %9, %cst_3 [1] : vector<8x8xf32> to vector<8xf32>
    %11 = vector.shape_cast %10 : vector<8xf32> to vector<8x1xf32>
    %12 = vector.broadcast %11 : vector<8x1xf32> to vector<8x8xf32>
    %13 = arith.subf %9, %12 : vector<8x8xf32>
    %14 = math.exp %13 : vector<8x8xf32>
    %cst_4 = arith.constant dense<0.000000e+00> : vector<8xf32>
    %15 = vector.multi_reduction <add>, %14, %cst_4 [1] : vector<8x8xf32> to vector<8xf32>
    %16 = vector.shape_cast %15 : vector<8xf32> to vector<8x1xf32>
    %17 = tpu.reciprocal %16 {approx = true} : vector<8x1xf32> -> vector<8x1xf32>
    %18 = arith.truncf %14 : vector<8x8xf32> to vector<8x8xbf16>
    %cst_5 = arith.constant dense<0.000000e+00> : vector<8x8xf32>
    %19 = tpu.matmul %18, %8, %cst_5 {dimension_numbers = #tpu.dot_dimension_numbers<[1], [0], [0], [1], [0, 0, 1, 1], [], []>} : vector<8x8xbf16>, vector<8x8xbf16>, vector<8x8xf32> -> vector<8x8xf32>
    %20 = vector.broadcast %17 : vector<8x1xf32> to vector<8x8xf32>
    %21 = arith.mulf %19, %20 : vector<8x8xf32>
    %22 = arith.truncf %21 : vector<8x8xf32> to vector<8x8xbf16>
    %c0_6 = arith.constant 0 : index
    %c0_7 = arith.constant 0 : index
    %23 = vector.load %arg11[%c0_6, %c0_7] : memref<8x32xbf16, #tpu.memory_space<vmem>>, vector<8x8xbf16>
    tpu.vector_store %arg11[%c0_6, %c0_7], %22 {strides = array<i32>} : memref<8x32xbf16, #tpu.memory_space<vmem>>, vector<8x8xbf16>,
    %24 = arith.index_cast %4 : i32 to index
    %c8 = arith.constant 8 : index
    %25 = vector.load %arg10[%24, %c8] : memref<8x96xbf16, #tpu.memory_space<vmem>>, vector<8x8xbf16>
    %c0_8 = arith.constant 0 : index
    %c40 = arith.constant 40 : index
    %26 = vector.load %arg10[%c0_8, %c40] : memref<8x96xbf16, #tpu.memory_space<vmem>>, vector<8x8xbf16>
    %c0_9 = arith.constant 0 : index
    %c72 = arith.constant 72 : index
    %27 = vector.load %arg10[%c0_9, %c72] : memref<8x96xbf16, #tpu.memory_space<vmem>>, vector<8x8xbf16>
    %cst_10 = arith.constant dense<0.000000e+00> : vector<8x8xf32>
    %28 = tpu.matmul %25, %26, %cst_10 {dimension_numbers = #tpu.dot_dimension_numbers<[1], [1], [0], [0], [0, 0, 1, 0], [], []>} : vector<8x8xbf16>, vector<8x8xbf16>, vector<8x8xf32> -> vector<8x8xf32>
    %cst_11 = arith.constant dense<0xFF800000> : vector<8xf32>
    %29 = vector.multi_reduction <maximumf>, %28, %cst_11 [1] : vector<8x8xf32> to vector<8xf32>
    %30 = vector.shape_cast %29 : vector<8xf32> to vector<8x1xf32>
    %31 = vector.broadcast %30 : vector<8x1xf32> to vector<8x8xf32>
    %32 = arith.subf %28, %31 : vector<8x8xf32>
    %33 = math.exp %32 : vector<8x8xf32>
    %cst_12 = arith.constant dense<0.000000e+00> : vector<8xf32>
    %34 = vector.multi_reduction <add>, %33, %cst_12 [1] : vector<8x8xf32> to vector<8xf32>
    %35 = vector.shape_cast %34 : vector<8xf32> to vector<8x1xf32>
    %36 = tpu.reciprocal %35 {approx = true} : vector<8x1xf32> -> vector<8x1xf32>
    %37 = arith.truncf %33 : vector<8x8xf32> to vector<8x8xbf16>
    %cst_13 = arith.constant dense<0.000000e+00> : vector<8x8xf32>
    %38 = tpu.matmul %37, %27, %cst_13 {dimension_numbers = #tpu.dot_dimension_numbers<[1], [0], [0], [1], [0, 0, 1, 1], [], []>} : vector<8x8xbf16>, vector<8x8xbf16>, vector<8x8xf32> -> vector<8x8xf32>
    %39 = vector.broadcast %36 : vector<8x1xf32> to vector<8x8xf32>
    %40 = arith.mulf %38, %39 : vector<8x8xf32>
    %41 = arith.truncf %40 : vector<8x8xf32> to vector<8x8xbf16>
    %c0_14 = arith.constant 0 : index
    %c8_15 = arith.constant 8 : index
    %42 = vector.load %arg11[%c0_14, %c8_15] : memref<8x32xbf16, #tpu.memory_space<vmem>>, vector<8x8xbf16>
    tpu.vector_store %arg11[%c0_14, %c8_15], %41 {strides = array<i32>} : memref<8x32xbf16, #tpu.memory_space<vmem>>, vector<8x8xbf16>,
    %43 = arith.index_cast %4 : i32 to index
    %c16 = arith.constant 16 : index
    %44 = vector.load %arg10[%43, %c16] : memref<8x96xbf16, #tpu.memory_space<vmem>>, vector<8x8xbf16>
    %c0_16 = arith.constant 0 : index
    %c48 = arith.constant 48 : index
    %45 = vector.load %arg10[%c0_16, %c48] : memref<8x96xbf16, #tpu.memory_space<vmem>>, vector<8x8xbf16>
    %c0_17 = arith.constant 0 : index
    %c80 = arith.constant 80 : index
    %46 = vector.load %arg10[%c0_17, %c80] : memref<8x96xbf16, #tpu.memory_space<vmem>>, vector<8x8xbf16>
    %cst_18 = arith.constant dense<0.000000e+00> : vector<8x8xf32>
    %47 = tpu.matmul %44, %45, %cst_18 {dimension_numbers = #tpu.dot_dimension_numbers<[1], [1], [0], [0], [0, 0, 1, 0], [], []>} : vector<8x8xbf16>, vector<8x8xbf16>, vector<8x8xf32> -> vector<8x8xf32>
    %cst_19 = arith.constant dense<0xFF800000> : vector<8xf32>
    %48 = vector.multi_reduction <maximumf>, %47, %cst_19 [1] : vector<8x8xf32> to vector<8xf32>
    %49 = vector.shape_cast %48 : vector<8xf32> to vector<8x1xf32>
    %50 = vector.broadcast %49 : vector<8x1xf32> to vector<8x8xf32>
    %51 = arith.subf %47, %50 : vector<8x8xf32>
    %52 = math.exp %51 : vector<8x8xf32>
    %cst_20 = arith.constant dense<0.000000e+00> : vector<8xf32>
    %53 = vector.multi_reduction <add>, %52, %cst_20 [1] : vector<8x8xf32> to vector<8xf32>
    %54 = vector.shape_cast %53 : vector<8xf32> to vector<8x1xf32>
    %55 = tpu.reciprocal %54 {approx = true} : vector<8x1xf32> -> vector<8x1xf32>
    %56 = arith.truncf %52 : vector<8x8xf32> to vector<8x8xbf16>
    %cst_21 = arith.constant dense<0.000000e+00> : vector<8x8xf32>
    %57 = tpu.matmul %56, %46, %cst_21 {dimension_numbers = #tpu.dot_dimension_numbers<[1], [0], [0], [1], [0, 0, 1, 1], [], []>} : vector<8x8xbf16>, vector<8x8xbf16>, vector<8x8xf32> -> vector<8x8xf32>
    %58 = vector.broadcast %55 : vector<8x1xf32> to vector<8x8xf32>
    %59 = arith.mulf %57, %58 : vector<8x8xf32>
    %60 = arith.truncf %59 : vector<8x8xf32> to vector<8x8xbf16>
    %c0_22 = arith.constant 0 : index
    %c16_23 = arith.constant 16 : index
    %61 = vector.load %arg11[%c0_22, %c16_23] : memref<8x32xbf16, #tpu.memory_space<vmem>>, vector<8x8xbf16>
    tpu.vector_store %arg11[%c0_22, %c16_23], %60 {strides = array<i32>} : memref<8x32xbf16, #tpu.memory_space<vmem>>, vector<8x8xbf16>,
    %62 = arith.index_cast %4 : i32 to index
    %c24 = arith.constant 24 : index
    %63 = vector.load %arg10[%62, %c24] : memref<8x96xbf16, #tpu.memory_space<vmem>>, vector<8x8xbf16>
    %c0_24 = arith.constant 0 : index
    %c56 = arith.constant 56 : index
    %64 = vector.load %arg10[%c0_24, %c56] : memref<8x96xbf16, #tpu.memory_space<vmem>>, vector<8x8xbf16>
    %c0_25 = arith.constant 0 : index
    %c88 = arith.constant 88 : index
    %65 = vector.load %arg10[%c0_25, %c88] : memref<8x96xbf16, #tpu.memory_space<vmem>>, vector<8x8xbf16>
    %cst_26 = arith.constant dense<0.000000e+00> : vector<8x8xf32>
    %66 = tpu.matmul %63, %64, %cst_26 {dimension_numbers = #tpu.dot_dimension_numbers<[1], [1], [0], [0], [0, 0, 1, 0], [], []>} : vector<8x8xbf16>, vector<8x8xbf16>, vector<8x8xf32> -> vector<8x8xf32>
    %cst_27 = arith.constant dense<0xFF800000> : vector<8xf32>
    %67 = vector.multi_reduction <maximumf>, %66, %cst_27 [1] : vector<8x8xf32> to vector<8xf32>
    %68 = vector.shape_cast %67 : vector<8xf32> to vector<8x1xf32>
    %69 = vector.broadcast %68 : vector<8x1xf32> to vector<8x8xf32>
    %70 = arith.subf %66, %69 : vector<8x8xf32>
    %71 = math.exp %70 : vector<8x8xf32>
    %cst_28 = arith.constant dense<0.000000e+00> : vector<8xf32>
    %72 = vector.multi_reduction <add>, %71, %cst_28 [1] : vector<8x8xf32> to vector<8xf32>
    %73 = vector.shape_cast %72 : vector<8xf32> to vector<8x1xf32>
    %74 = tpu.reciprocal %73 {approx = true} : vector<8x1xf32> -> vector<8x1xf32>
    %75 = arith.truncf %71 : vector<8x8xf32> to vector<8x8xbf16>
    %cst_29 = arith.constant dense<0.000000e+00> : vector<8x8xf32>
    %76 = tpu.matmul %75, %65, %cst_29 {dimension_numbers = #tpu.dot_dimension_numbers<[1], [0], [0], [1], [0, 0, 1, 1], [], []>} : vector<8x8xbf16>, vector<8x8xbf16>, vector<8x8xf32> -> vector<8x8xf32>
    %77 = vector.broadcast %74 : vector<8x1xf32> to vector<8x8xf32>
    %78 = arith.mulf %76, %77 : vector<8x8xf32>
    %79 = arith.truncf %78 : vector<8x8xf32> to vector<8x8xbf16>
    %c0_30 = arith.constant 0 : index
    %c24_31 = arith.constant 24 : index
    %80 = vector.load %arg11[%c0_30, %c24_31] : memref<8x32xbf16, #tpu.memory_space<vmem>>, vector<8x8xbf16>
    tpu.vector_store %arg11[%c0_30, %c24_31], %79 {strides = array<i32>} : memref<8x32xbf16, #tpu.memory_space<vmem>>, vector<8x8xbf16>,
    %c0_32 = arith.constant 0 : index
    %c0_33 = arith.constant 0 : index
    %81 = vector.load %arg11[%c0_32, %c0_33] : memref<8x32xbf16, #tpu.memory_space<vmem>>, vector<8x32xbf16>
    %c0_34 = arith.constant 0 : index
    %c0_35 = arith.constant 0 : index
    %82 = vector.load %arg7[%c0_34, %c0_35] : memref<32x32xbf16, #tpu.memory_space<vmem>>, vector<32x32xbf16>
    %cst_36 = arith.constant dense<0.000000e+00> : vector<8x32xf32>
    %83 = tpu.matmul %81, %82, %cst_36 {dimension_numbers = #tpu.dot_dimension_numbers<[1], [0], [0], [1], [0, 0, 1, 1], [], []>} : vector<8x32xbf16>, vector<32x32xbf16>, vector<8x32xf32> -> vector<8x32xf32>
    %c0_37 = arith.constant 0 : index
    %c0_38 = arith.constant 0 : index
    %84 = vector.load %arg8[%c0_37, %c0_38] : memref<1x32xf32, #tpu.memory_space<vmem>>, vector<1x32xf32>
    %85 = vector.broadcast %84 : vector<1x32xf32> to vector<8x32xf32>
    %86 = arith.addf %83, %85 : vector<8x32xf32>
    %c0_39 = arith.constant 0 : index
    %c0_40 = arith.constant 0 : index
    %c0_41 = arith.constant 0 : index
    %87 = vector.load %arg9[%c0_39, %c0_40, %c0_41] : memref<1x8x32xf32, #tpu.memory_space<vmem>>, vector<1x8x32xf32>
    %88 = vector.shape_cast %87 : vector<1x8x32xf32> to vector<8x32xf32>
    %89 = vector.shape_cast %86 : vector<8x32xf32> to vector<1x8x32xf32>
    tpu.vector_store %arg9[%c0_39, %c0_40, %c0_41], %89 {strides = array<i32>} : memref<1x8x32xf32, #tpu.memory_space<vmem>>, vector<1x8x32xf32>,
    return
  }
  func.func @transform_0(%arg0: i32, %arg1: i32) -> (i32, i32, i32) {
    %c0_i32 = arith.constant 0 : i32
    %c0_i32_0 = arith.constant 0 : i32
    %c0_i32_1 = arith.constant 0 : i32
    return %arg0, %c0_i32, %c0_i32_0 : i32, i32, i32
  }
  func.func @transform_1(%arg0: i32, %arg1: i32) -> (i32, i32) {
    %c0_i32 = arith.constant 0 : i32
    %c0_i32_0 = arith.constant 0 : i32
    %c0_i32_1 = arith.constant 0 : i32
    return %c0_i32, %c0_i32_0 : i32, i32
  }
  func.func @transform_2(%arg0: i32, %arg1: i32) -> (i32, i32) {
    %c0_i32 = arith.constant 0 : i32
    %c0_i32_0 = arith.constant 0 : i32
    %c0_i32_1 = arith.constant 0 : i32
    return %c0_i32, %c0_i32_0 : i32, i32
  }
  func.func @transform_3(%arg0: i32, %arg1: i32) -> (i32, i32) {
    %c0_i32 = arith.constant 0 : i32
    %c0_i32_0 = arith.constant 0 : i32
    %c0_i32_1 = arith.constant 0 : i32
    return %c0_i32, %c0_i32_0 : i32, i32
  }
  func.func @transform_4(%arg0: i32, %arg1: i32) -> (i32, i32) {
    %c0_i32 = arith.constant 0 : i32
    %c0_i32_0 = arith.constant 0 : i32
    %c0_i32_1 = arith.constant 0 : i32
    return %c0_i32, %c0_i32_0 : i32, i32
  }
  func.func @transform_5(%arg0: i32, %arg1: i32) -> (i32, i32) {
    %c0_i32 = arith.constant 0 : i32
    %c0_i32_0 = arith.constant 0 : i32
    %c0_i32_1 = arith.constant 0 : i32
    return %c0_i32, %c0_i32_0 : i32, i32
  }
  func.func @transform_6(%arg0: i32, %arg1: i32) -> (i32, i32) {
    %c0_i32 = arith.constant 0 : i32
    %c0_i32_0 = arith.constant 0 : i32
    %c0_i32_1 = arith.constant 0 : i32
    return %c0_i32, %c0_i32_0 : i32, i32
  }
  func.func @transform_7(%arg0: i32, %arg1: i32) -> (i32, i32, i32) {
    %c0_i32 = arith.constant 0 : i32
    %c0_i32_0 = arith.constant 0 : i32
    return %arg0, %arg1, %c0_i32 : i32, i32, i32
  }
}

</mosaic_0001>

<bundles_post_ra>
// kernel: tpu_custom_call.1
= control target key start
LH: loop header
LB: loop body
LE: loop exit
PB: predicated region body
PF: predicated region fallthrough
CT: control target
= control target key end

     0   :  { %s1917_s0 = inlined_call_operand.hbm [shape: bf16[2,8,32], index: 0, kind: input, shape index: {}]   ;;  %s1918_s1 = inlined_call_operand.vmem [shape: f32[1,32], index: 1, kind: input, shape index: {}]   ;;  %s1919_s2 = inlined_call_operand.vmem [shape: f32[1,32], index: 2, kind: input, shape index: {}]   ;;  %s1920_s3 = inlined_call_operand.hbm [shape: bf16[32,96], index: 3, kind: input, shape index: {}]   ;;  %s1921_s4 = inlined_call_operand.hbm [shape: f32[1,96], index: 4, kind: input, shape index: {}]   ;;  %s1922_s5 = inlined_call_operand.vmem [shape: bf16[32,32], index: 5, kind: input, shape index: {}]   ;;  %s1923_s6 = inlined_call_operand.vmem [shape: f32[1,32], index: 6, kind: input, shape index: {}]   ;;  %s1924_s7 = inlined_call_operand.hbm [shape: f32[2,8,32], index: 7, kind: output, shape index: {}]  }
   0x1   :  { %1937 = sst [smem:[#allocation15_spill]] %s1920_s3 }
   0x2   :  { %12 = vsyncpa [#allocation5], 0 }
   0x3   :  { %13 = vsyncpa [#allocation8], 0 }
   0x4   :  { %14 = vsyncpa [#allocation6], 0 }
   0x5   :  { %16 = vsyncpa [#allocation6 + $0x1], 0  ;;  %s1601_s24 = smov 0   ;;  %s1603_s25 = smov 0  }
   0x6   :  { %s1605_s26 = smov 0   ;;  %s1607_s27 = smov 0  }
   0x7   :  { %s1609_s28 = smov 0   ;;  %s1611_s29 = smov 0  }
   0x8 LB: > { %s1539_s30 = smov [#allocation7]   ;;  %s1105_s9 = sadd.s32 4294967295, %s1537_s29   ;;  %s1537_s29 = sphi %s1611_s29, %s22_s29   ;;  %s1533_s28 = sphi %s1609_s28, %s1963_s28   ;;  %s1529_s27 = sphi %s1607_s27, %s1962_s27   ;;  %s1525_s26 = sphi %s1605_s26, %s1961_s26   ;;  %s1521_s25 = sphi %s1603_s25, %s1960_s25   ;;  %s1517_s24 = sphi %s1601_s24, %s1959_s24  }
   0x9   : > { %s250_s8 = sshll.u32 %s1539_s30, 4  ;;  %p1107_p0 = scmp.ge.s32.totalorder %s1537_s29, 1  ;;  %s251_s8 = int_to_ptr.vmem [resolvable:$true] %s250_s8 }
   0xa   : > { %p1635_p1 = scmp.eq.s32.totalorder %s1105_s9, 0  ;;  %p219_p2 = scmp.lt.s32.totalorder %s1537_s29, 3 }
   0xb   : > { %s1941_s3 = sld [smem:[#allocation15_spill]] }
   0xc   : > { %s1938_s10 = scalar_select %p1635_p1, 1, 0 }
   0xd   : > { %p1640_p3 = pnand %p1107_p0, %p219_p2 }
   0xf   : > { %s1939_s11 = scalar_select %p1640_p3, 1, 0 }
  0x10   : > { %p1925_p4 = pneg %p1640_p3 }
  0x11   : > { %s1365_s15 = scalar_lea.hbm %s1941_s3, 256 }
  0x12   : > { %p1651_p5 = pnand %p1925_p4, %p1635_p1  ;;  %p1366_p6 = scmp.ne.s32.totalorder %s1941_s3, %s1365_s15 }
  0x13   : > { %p1372_p10 = scmp.lt.u32.totalorder %s1365_s15, %s1941_s3 }
  0x14   : > { %s1940_s12 = scalar_select %p1651_p5, 1, 0 }
  0x15   : > { %p1931_p7 = pneg %p1651_p5 }
  0x17   : > { %p1368_p8 = pnand %p1931_p7, %p1366_p6 }
  0x19   : > { %p1369_p9 = pneg %p1368_p8 }
  0x1b   : > { %p1374_p11 = pnand %p1372_p10, %p1369_p9 }
  0x1d   : > { %1377 = shalt.err (!%p1374_p11)
}
  0x1e   : > { %s1378_s20 = scalar_lea.vmem %s251_s8, 256  ;;  %p1386_p2 = scmp.lt.s32.totalorder %s251_s8, %s251_s8 }
  0x1f   : > { %p1379_p12 = scmp.ne.s32.totalorder %s251_s8, %s1378_s20  ;;  %p1387_p4 = scmp.lt.s32.totalorder %s1378_s20, %s1378_s20 }
  0x21   : > { %p1381_p13 = pnand %p1379_p12, %p1931_p7  ;;  %p1388_p3 = por %p1387_p4, %p1386_p2 }
  0x23   : > { %p1382_p0 = pneg %p1381_p13 }
  0x25   : > { %p1389_p1 = pnand %p1388_p3, %p1382_p0 }
  0x27   : > { %1392 = shalt.err (!%p1389_p1)
}
  0x28   : > { %s1540_s21 = smov 64   ;;  %s1541_s22 = smov 4  }
  0x29   : > { %1254 = dma.hbm_to_vmem [thread:$0]  (!%p1651_p5), %s1941_s3, 256, %s251_s8, [#allocation8], %s1540_s21, %s1540_s21, %s1541_s22  }
  0x2a   : > { %s1106_s13 = sadd.s32 4294967294, %s1537_s29   ;;  %s34_s14 = sadd.s32 1, %s1533_s28 }
  0x2b   : > { %p36_p1 = scmp.ge.s32.totalorder %s34_s14, 2  ;;  %s41_s15 = sadd.s32 1, %s1525_s26 }
  0x2c   : > { %p54_p3 = scmp.ne.s32.totalorder %s1521_s25, %s1517_s24  ;;  %p205_p4 = scmp.ne.s32.totalorder %s1525_s26, %s1521_s25 }
  0x2d   : > { %s1965_s14 = smov (%p36_p1, %s34_s14), 0  ;;  %p1943_p6 = scmp.ne.s32.totalorder %s1938_s10, 0 }
  0x2e   : > { %1942 = sst [smem:[#allocation14_spill]] %s1965_s14  ;;  %p206_p9 = scmp.eq.s32.totalorder %s1105_s9, 1 }
  0x2f   : > { %p1688_p8 = por %p1943_p6, %p54_p3  ;;  %s38_s8 = ssub.s32 %s1533_s28, %s1965_s14 }
  0x30   : > { %p212_p10 = scmp.eq.s32.totalorder %s1106_s13, 1  ;;  %p39_p11 = scmp.eq.s32.totalorder %s38_s8, 0 }
  0x31   : > { %s1944_s16 = scalar_select %p1688_p8, 1, 0 }
  0x32   : > { %p1696_p12 = por %p206_p9, %p205_p4  ;;  %p1700_p13 = por %p212_p10, %p54_p3 }
  0x33   : > { %s1108_s19 = sshll.u32 %s1529_s27, 6  ;;  %s1542_s9 = smov [#allocation4]  }
  0x34   : > { %s1945_s17 = scalar_select %p1696_p12, 1, 0 }
  0x35   : > { %s1946_s18 = scalar_select %p1700_p13, 1, 0 }
  0x36   : > { %s1706_s20 = scalar_select %p39_p11, %s1525_s26, %s41_s15  }
  0x37   : > { %s1711_s23 = scalar_lea.hbm %s1917_s0, %s1108_s19  ;;  %s234_s30 = sshll.u32 %s1542_s9, 4  ;;  %s235_s30 = int_to_ptr.vmem [resolvable:$true] %s234_s30 }
  0x38   : > { %p1947_p0 = scmp.ne.s32.totalorder %s1939_s11, 0  ;;  %s1543_s15 = smov [#allocation9]  }
  0x39   : > { %s264_s8 = sshll.u32 %s1543_s15, 4  ;;  %s1393_s19 = scalar_lea.hbm %s1711_s23, 64  ;;  %s265_s8 = int_to_ptr.vmem [resolvable:$true] %s264_s8 }
  0x3a   : > { %p1948_p2 = pneg %p1947_p0  ;;  %p1394_p3 = scmp.ne.s32.totalorder %s1711_s23, %s1393_s19 }
  0x3b   : > { %s1398_s9 = scalar_lea.hbm %s1917_s0, 128  ;;  %p1399_p10 = scmp.lt.u32.totalorder %s1711_s23, %s1917_s0 }
  0x3c   : > { %p1718_p1 = pnand %p1948_p2, %p1688_p8  ;;  %p1400_p11 = scmp.lt.u32.totalorder %s1398_s9, %s1393_s19 }
  0x3d   : > { %p1402_p7 = scmp.lt.u32.totalorder %s1393_s19, %s1711_s23 }
  0x3e   : > { %p1395_p4 = pneg %p1718_p1  ;;  %p1401_p2 = por %p1400_p11, %p1399_p10 }
  0x40   : > { %p1396_p6 = pnand %p1395_p4, %p1394_p3  ;;  %p1403_p13 = por %p1402_p7, %p1401_p2 }
  0x42   : > { %p1397_p9 = pneg %p1396_p6 }
  0x44   : > { %p1404_p12 = pnand %p1403_p13, %p1397_p9 }
  0x46   : > { %1407 = shalt.err (!%p1404_p12)
}
  0x47   : > { %s1408_s15 = scalar_lea.vmem %s235_s30, 64  ;;  %p1416_p0 = scmp.lt.s32.totalorder %s235_s30, %s235_s30 }
  0x48   : > { %p1409_p8 = scmp.ne.s32.totalorder %s235_s30, %s1408_s15  ;;  %p1417_p5 = scmp.lt.s32.totalorder %s1408_s15, %s1408_s15 }
  0x4a   : > { %p1411_p3 = pnand %p1409_p8, %p1395_p4  ;;  %p1418_p10 = por %p1417_p5, %p1416_p0 }
  0x4c   : > { %p1412_p6 = pneg %p1411_p3 }
  0x4e   : > { %p1419_p11 = pnand %p1418_p10, %p1412_p6 }
  0x50   : > { %1422 = shalt.err (!%p1419_p11)
}
  0x51   : > { %1251 = dma.hbm_to_vmem [thread:$0]  (!%p1718_p1), %s1711_s23, 64, %s235_s30, [#allocation5]  }
  0x52   : > { %s1423_s19 = scalar_lea.hbm %s1921_s4, 16  ;;  %p1950_p8 = scmp.ne.s32.totalorder %s1940_s12, 0 }
  0x53   : > { %p1424_p7 = scmp.ne.s32.totalorder %s1921_s4, %s1423_s19  ;;  %p1430_p0 = scmp.lt.u32.totalorder %s1423_s19, %s1921_s4 }
  0x54   : > { %p1951_p12 = pneg %p1950_p8 }
  0x56   : > { %p1426_p13 = pnand %p1424_p7, %p1951_p12 }
  0x58   : > { %p1427_p5 = pneg %p1426_p13 }
  0x5a   : > { %p1432_p4 = pnand %p1430_p0, %p1427_p5 }
  0x5c   : > { %1435 = shalt.err (!%p1432_p4)
}
  0x5d   : > { %s1436_s23 = scalar_lea.vmem %s265_s8, 16  ;;  %p1952_p9 = pmov %p1951_p12 }
  0x5e   : > { %p1437_p1 = scmp.ne.s32.totalorder %s265_s8, %s1436_s23  ;;  %s1443_s30 = scalar_lea.vmem %s265_s8, 32 }
  0x5f   : > { %p1444_p6 = scmp.lt.s32.totalorder %s265_s8, %s265_s8  ;;  %p1445_p10 = scmp.lt.s32.totalorder %s1443_s30, %s1436_s23 }
  0x60   : > { %p1439_p2 = pnand %p1437_p1, %p1952_p9 }
  0x61   : > { %p1446_p11 = por %p1445_p10, %p1444_p6 }
  0x62   : > { %p1440_p3 = pneg %p1439_p2 }
  0x64   : > { %p1447_p7 = pnand %p1446_p11, %p1440_p3 }
  0x66   : > { %1450 = shalt.err (!%p1447_p7)
}
  0x67   : > { %1257 = dma.hbm_to_vmem [thread:$0]  (!%p1950_p8), %s1921_s4, 16, %s265_s8, [#allocation8]  }
  0x68   : > { %p1953_p12 = scmp.ne.s32.totalorder %s1939_s11, 0 }
  0x69   : > { %p1954_p13 = scmp.ne.s32.totalorder (!%p1953_p12), %s1944_s16, 0 }
  0x6a   : > { %283 = sbr.rel (%p1953_p12) target bundleno = 1783 (0x6f7), region = 48 }
  0x71   : > { %1504 = dma.done.wait (%p1954_p13), [#allocation5], 64  }
  0x72   : > { %1506 = vsyncadd (%p1954_p13), [#allocation5], 4294967232  ;;  %p1955_p5 = scmp.ne.s32.totalorder %s1938_s10, 0 }
  0x74   : > { %1508 = dma.done.wait (%p1955_p5), [#allocation8], 272  }
  0x75   : > { %1510 = vsyncadd (%p1955_p5), [#allocation8], 4294967024  ;;  %vm325_vm0 = vcmask 261120   ;;  %v323_v0 = vld [vmem:[#allocation4] sm:$0xf]  ;;  %v1336_v8 = vld [vmem:[#allocation7] sm:$0xff]  }
  0x76   : > { %v324_v1 = vunpack.c.l.bf16 %v323_v0  ;;  %v1544_v9 = vmov 0.0   ;;  %vm1545_vm1 = vmmov 0   ;;  %v1337_v10 = vld [vmem:[#allocation7 + $0x8] sm:$0xff]   ;;  %v1115_v15 = vld [vmem:[%s1918_s1] ss:$0 sm:$0xff]  ;;  %vm424_vm2 = vcmask 781312  }
  0x77   : > { %1172 = vmatprep.subr.bf16.mxu0 %v1544_v9  ;;  %1176 = vmatprep.mubr.msk.bf16.mxu0 %vm1545_vm1, %v1544_v9  ;;  %v1116_v17 = vld [vmem:[%s1919_s2] ss:$0 sm:$0xff]  ;;  %v1117_v21 = vld [vmem:[#allocation9] ss:$0 sm:$0xff]  ;;  %s1546_s8 = smov 120   ;;  %s1547_s14 = smov 96  }
  0x78   : > { %v326_v2 = vsel %vm325_vm0, %v324_v1, 0.0  ;;  %1173 = vmatpush3.bf16.msra.mxu0 %v1336_v8  ;;  %1180 = vmatprep.subr.bf16.mxu1 %v1544_v9  ;;  %s1548_s19 = smov 88   ;;  %s1549_s21 = smov 80   ;;  %vm438_vm3 = vcmask 64512   ;;  %vm501_vm4 = vcmask 1043456   ;;  %vm547_vm5 = vcmask 60416  }
  0x79   : > { %327 = vadd.xlane.f32.xlu0 %v326_v2  ;;  %1174 = vmatprep.subr.bf16.mxu0 %v1544_v9  ;;  %s1550_s22 = smov 112   ;;  %s1551_s9 = smov 72   ;;  %vm674_vm6 = vcmask 126016   ;;  %vm801_vm7 = vcmask 191616   ;;  %vm928_vm8 = vcmask 257216  }
  0x7a   : > { %1182 = vmatprep.mubr.msk.bf16.mxu1 %vm1545_vm1, %v1544_v9  ;;  %s1552_s15 = smov 104   ;;  %s1553_s23 = smov 64  }
  0x7b   : > { %s1554_s30 = smov 56   ;;  %s1555_s13 = smov 48  }
  0x7c   : > { %1175 = vmatpush3.bf16.msra.mxu0 %v1337_v10  ;;  %s1556_s3 = smov 40   ;;  %s1557_s10 = smov 8  }
  0x7d   : > { %1186 = vmatprep.subr.bf16.mxu0 %v1544_v9  ;;  %p1956_p0 = scmp.ne.s32.totalorder %s1945_s17, 0  ;;  %s1560_s16 = smov [#allocation10]  }
 0x106   : > { %v328_v3 = vpop.xlane.xlu0 %327 }
 0x107   : > { %v330_v4 = vmul.f32 0.03125, %v328_v3 }
 0x109   : > { %v331_v5 = vsub.f32 %v324_v1, %v330_v4 }
 0x10b   : > { %v332_v6 = vmul.f32 %v331_v5, %v331_v5 }
 0x10d   : > { %v333_v7 = vsel %vm325_vm0, %v332_v6, 0.0 }
 0x10e   : > { %334 = vadd.xlane.f32.xlu0 %v333_v7 }
 0x19b   : > { %v335_v11 = vpop.xlane.xlu0 %334 }
 0x19c   : > { %v336_v12 = vmul.f32 0.03125, %v335_v11 }
 0x19e   : > { %v337_v13 = vadd.f32 1e-05, %v336_v12 }
 0x1a0   : > { %1347 = vrsqrt.f32 %v337_v13 }
 0x1aa   : > { %v1348_v14 = vpop.eup %1347 }
 0x1ab   : > { %v339_v16 = vmul.f32 %v1348_v14, %v331_v5 }
 0x1ad   : > { %v347_v18 = vmul.f32 %v1115_v15, %v339_v16 }
 0x1af   : > { %v355_v19 = vadd.f32 %v1116_v17, %v347_v18 }
 0x1b1   : > { %v356_v20 = vpack.c.bf16 %v355_v19, %v355_v19 }
 0x1b3   : > { %1177 = vmatmul.mubr.msk.bf16.vlgmr.msra.gmra.mrb[0].mxu0 %vm325_vm0, %v356_v20 }
 0x1b4   : > { %1188 = vmatprep.mubr.msk.bf16.mxu0 %vm1545_vm1, %v1544_v9 }
 0x286   : > { %v417_v22 = vpop.f32.mrb[0].mxu0 }
 0x287   : > { %v418_v23 = vadd.f32 %v1117_v21, %v417_v22  ;;  %v1178_v24 = vpop.f32.mrb[1].mxu0 }
 0x288   : > { %v420_v25 = vpop.f32.mrb[2].mxu0 }
 0x289   : > { %v423_v26 = vpack.c.bf16 %v418_v23, %v418_v23  ;;  %v1179_v27 = vpop.f32.mrb[3].mxu0 }
 0x28b   : > { %425 = vst.msk [vmem:[#allocation2] sm:$0xf] %vm424_vm2, %v423_v26 }
 0x292   : > { %v1338_v28 = vld [vmem:[#allocation2] ss:$0 sps:$4 sm:$0xff]  }
 0x293   : > { %v1792_v29 = vld [vmem:[#allocation2] ss:$0 sps:$4 sm:$0xff]   ;;  %554 = vrot.lane.b32.xlu0 %v1338_v28, %s1546_s8  ;;  %s1455_s8 = sshll.u32 %s1560_s16, 4  ;;  %s1456_s8 = int_to_ptr.vmem [resolvable:$false] %s1455_s8 }
 0x294   : > { %436 = vrot.lane.b32.xlu1 %v1792_v29, %s1547_s14  ;;  %v1795_v30 = vld [vmem:[#allocation2] ss:$0 sps:$4 sm:$0xff]   ;;  %s1558_s14 = smov 16  }
 0x295   : > { %v1798_v31 = vld [vmem:[#allocation2] ss:$0 sps:$4 sm:$0xff]  }
 0x296   : > { %v1342_v32 = vld [vmem:[#allocation2] ss:$0 sps:$4 sm:$0xff]  }
 0x297   : > { %v1801_v33 = vld [vmem:[#allocation2] ss:$0 sps:$4 sm:$0xff]  }
 0x298   : > { %559 = vrot.lane.b32.xlu1 %v1795_v30, %s1548_s19  ;;  %v1344_v34 = vld [vmem:[#allocation2] ss:$0 sps:$4 sm:$0xff]   ;;  %s1559_s19 = smov 24  }
 0x299   : > { %v431_v38 = vld [vmem:[#allocation2] sm:$0xf] }
 0x29c   : > { %686 = vrot.lane.b32.xlu1 %v1798_v31, %s1549_s21  ;;  %s315_s21 = sand.u32 1, %s1521_s25  }
 0x2a0   : > { %681 = vrot.lane.b32.xlu1 %v1342_v32, %s1550_s22  ;;  %s1114_s22 = sshll.u32 %s315_s21, 3 }
 0x2a4   : > { %813 = vrot.lane.b32.xlu1 %v1801_v33, %s1551_s9 }
 0x2a8   : > { %808 = vrot.lane.b32.xlu1 %v1344_v34, %s1552_s15 }
 0x305   : > { %v555_v41 = vpop.permute.xlu0 %554 }
 0x306   : > { %v437_v35 = vpop.permute.xlu1 %436 }
 0x307   : > { %v443_v36 = vsel %vm438_vm3, %v437_v35, 0 }
 0x308   : > { %1181 = vmatpush3.bf16.xpose.msra.mxu1 %v443_v36 }
 0x309   : > { %1192 = vmatprep.subr.bf16.mxu1 %v1544_v9 }
 0x30a   : > { %v560_v37 = vpop.permute.xlu1 %559 }
 0x30b   : > { %v565_v39 = vsel %vm438_vm3, %v560_v37, 0 }
 0x30e   : > { %v687_v40 = vpop.permute.xlu1 %686 }
 0x30f   : > { %1183 = vmatmul.mubr.msk.bf16.vlgmr.msra.gmra.mrb[0].mxu1 %vm438_vm3, %v431_v38  ;;  %v692_v43 = vsel %vm438_vm3, %v687_v40, 0 }
 0x310   : > { %1193 = vmatpush3.bf16.xpose.msra.mxu1 %v565_v39  ;;  %1194 = vmatprep.mubr.msk.bf16.mxu1 %vm1545_vm1, %v1544_v9 }
 0x311   : > { %1204 = vmatprep.subr.bf16.mxu1 %v1544_v9 }
 0x312   : > { %v682_v42 = vpop.permute.xlu1 %681 }
 0x316   : > { %v814_v44 = vpop.permute.xlu1 %813 }
 0x317   : > { %1195 = vmatmul.mubr.msk.bf16.vlgmr.msra.gmra.mrb[4].mxu1 %vm438_vm3, %v555_v41  ;;  %v819_v45 = vsel %vm438_vm3, %v814_v44, 0 }
 0x318   : > { %1205 = vmatpush3.bf16.xpose.msra.mxu1 %v692_v43  ;;  %1206 = vmatprep.mubr.msk.bf16.mxu1 %vm1545_vm1, %v1544_v9 }
 0x319   : > { %1216 = vmatprep.subr.bf16.mxu1 %v1544_v9 }
 0x31a   : > { %v809_v46 = vpop.permute.xlu1 %808 }
 0x31f   : > { %1207 = vmatmul.mubr.msk.bf16.vlgmr.msra.gmra.mrb[8].mxu1 %vm438_vm3, %v682_v42 }
 0x320   : > { %1217 = vmatpush3.bf16.xpose.msra.mxu1 %v819_v45  ;;  %1218 = vmatprep.mubr.msk.bf16.mxu1 %vm1545_vm1, %v1544_v9 }
 0x321   : > { %1228 = vmatprep.subr.bf16.mxu1 %v1544_v9 }
 0x327   : > { %1219 = vmatmul.mubr.msk.bf16.vlgmr.msra.gmra.mrb[12].mxu1 %vm438_vm3, %v809_v46 }
 0x328   : > { %1232 = vmatprep.mubr.msk.bf16.mxu1 %vm1545_vm1, %v1544_v9 }
 0x3e2   : > { %v479_v47 = vpop.f32.mrb[0].mxu1 }
 0x3e3   : > { %v1184_v48 = vpop.f32.mrb[1].mxu1  ;;  %v485_v49 = vsel %vm438_vm3, %v479_v47, -inf }
 0x3e4   : > { %486 = vmax.xlane.f32.xlu1 %v485_v49  ;;  %v482_v50 = vpop.f32.mrb[2].mxu1 }
 0x3e5   : > { %v1185_v51 = vpop.f32.mrb[3].mxu1 }
 0x3ea   : > { %v601_v52 = vpop.f32.mrb[4].mxu1 }
 0x3eb   : > { %v1196_v53 = vpop.f32.mrb[5].mxu1  ;;  %v607_v54 = vsel %vm438_vm3, %v601_v52, -inf }
 0x3ec   : > { %608 = vmax.xlane.f32.xlu0 %v607_v54  ;;  %v604_v55 = vpop.f32.mrb[6].mxu1 }
 0x3ed   : > { %v1197_v56 = vpop.f32.mrb[7].mxu1 }
 0x3ee   : > { %v1345_v56 = vld [vmem:[%s1922_s5] sm:$0xff]  }
 0x3ef   : > { %1229 = vmatpush3.bf16.msra.mxu1 %v1345_v56 }
 0x3f0   : > { %1230 = vmatprep.subr.bf16.mxu1 %v1544_v9 }
 0x3f2   : > { %v728_v57 = vpop.f32.mrb[8].mxu1 }
 0x3f3   : > { %v1208_v58 = vpop.f32.mrb[9].mxu1  ;;  %v734_v2 = vsel %vm438_vm3, %v728_v57, -inf }
 0x3f4   : > { %v731_v59 = vpop.f32.mrb[10].mxu1 }
 0x3f5   : > { %496 = vrot.lane.b32.xlu1 %v1792_v29, %s1553_s23  ;;  %v1209_v60 = vpop.f32.mrb[11].mxu1  ;;  %s1144_s23 = sshll.u32 %s1529_s27, 7  ;;  %s1000_s27 = scalar_lea.sflag [#allocation6], %s315_s21 }
 0x3f6   : > { %v1346_v60 = vld [vmem:[%s1922_s5 + $0x8] sm:$0xff]   ;;  %s1869_s11 = scalar_lea.hbm %s1924_s7, %s1144_s23 }
 0x3f7   : > { %1231 = vmatpush3.bf16.msra.mxu1 %v1346_v60 }
 0x3fa   : > { %v855_v61 = vpop.f32.mrb[12].mxu1 }
 0x3fb   : > { %v1220_v62 = vpop.f32.mrb[13].mxu1  ;;  %v861_v63 = vsel %vm438_vm3, %v855_v61, -inf }
 0x3fc   : > { %862 = vmax.xlane.f32.xlu0 %v861_v63  ;;  %v858_v0 = vpop.f32.mrb[14].mxu1 }
 0x3fd   : > { %v1221_v1 = vpop.f32.mrb[15].mxu1 }
 0x412   : > { %618 = vrot.lane.b32.xlu0 %v1795_v30, %s1554_s30  ;;  %s317_s30 = scalar_lea.vmem [#allocation10], %s1114_s22 }
 0x419   : > { %735 = vmax.xlane.f32.xlu1 %v734_v2 }
 0x42a   : > { %745 = vrot.lane.b32.xlu1 %v1798_v31, %s1555_s13  ;;  %s1014_s13 = sshll.u32 %s317_s30, 4  ;;  %s1871_s13 = int_to_ptr.vmem [resolvable:$true] %s1014_s13 }
 0x42b   : > { %s1451_s12 = scalar_lea.vmem %s1871_s13, 128  ;;  %p1458_p9 = scmp.lt.s32.totalorder %s1871_s13, %s1456_s8 }
 0x42c   : > { %p1452_p8 = scmp.ne.s32.totalorder %s1871_s13, %s1451_s12 }
 0x42e   : > { %872 = vrot.lane.b32.xlu1 %v1801_v33, %s1556_s3  ;;  %p1453_p4 = pnand %p1452_p8, %p1956_p0 }
 0x430   : > { %p1454_p1 = pneg %p1453_p4 }
 0x471   : > { %v487_v3 = vpop.xlane.xlu1 %486 }
 0x472   : > { %v488_v4 = vsub.f32 %v479_v47, %v487_v3 }
 0x474   : > { %v489_v5 = vmul.f32 1.442695, %v488_v4 }
 0x475   : > { %v497_v6 = vpop.permute.xlu1 %496 }
 0x476   : > { %1349 = vpow2.f32 %v489_v5  ;;  %v503_v7 = vsel %vm501_vm4, %v497_v6, 0 }
 0x477   : > { %1187 = vmatpush3.bf16.msra.mxu0 %v503_v7 }
 0x478   : > { %1198 = vmatprep.subr.bf16.mxu0 %v1544_v9 }
 0x479   : > { %v609_v8 = vpop.xlane.xlu0 %608 }
 0x47a   : > { %v610_v10 = vsub.f32 %v601_v52, %v609_v8 }
 0x47c   : > { %v611_v11 = vmul.f32 1.442695, %v610_v10  ;;  %v1139_v10 = vld [vmem:[%s1923_s6] ss:$0 sm:$0xff] }
 0x47e   : > { %1351 = vpow2.f32 %v611_v11 }
 0x480   : > { %v1350_v12 = vpop.eup %1349 }
 0x481   : > { %v495_v13 = vpack.c.bf16 %v1350_v12, %v1350_v12  ;;  %v491_v24 = vsel %vm438_vm3, %v1350_v12, 0.0 }
 0x483   : > { %1189 = vmatmul.mubr.msk.bf16.vlgmr.msra.gmra.mrb[4].mxu0 %vm438_vm3, %v495_v13 }
 0x484   : > { %1200 = vmatprep.mubr.msk.bf16.mxu0 %vm1545_vm1, %v1544_v9 }
 0x488   : > { %v1352_v14 = vpop.eup %1351 }
 0x489   : > { %v863_v15 = vpop.xlane.xlu0 %862  ;;  %v613_v16 = vsel %vm438_vm3, %v1352_v14, 0.0  ;;  %v617_v21 = vpack.c.bf16 %v1352_v14, %v1352_v14 }
 0x48a   : > { %v864_v17 = vsub.f32 %v855_v61, %v863_v15  ;;  %614 = vadd.xlane.f32.xlu0 %v613_v16 }
 0x48c   : > { %v865_v18 = vmul.f32 1.442695, %v864_v17 }
 0x48d   : > { %v619_v19 = vpop.permute.xlu0 %618 }
 0x48e   : > { %1353 = vpow2.f32 %v865_v18  ;;  %v624_v20 = vsel %vm501_vm4, %v619_v19, 0 }
 0x48f   : > { %1199 = vmatpush3.bf16.msra.mxu0 %v624_v20 }
 0x490   : > { %1210 = vmatprep.subr.bf16.mxu0 %v1544_v9 }
 0x492   : > { %1201 = vmatmul.mubr.msk.bf16.vlgmr.msra.gmra.mrb[8].mxu0 %vm438_vm3, %v617_v21 }
 0x493   : > { %1212 = vmatprep.mubr.msk.bf16.mxu0 %vm1545_vm1, %v1544_v9 }
 0x498   : > { %v1354_v22 = vpop.eup %1353 }
 0x499   : > { %v867_v23 = vsel %vm438_vm3, %v1354_v22, 0.0  ;;  %v871_v35 = vpack.c.bf16 %v1354_v22, %v1354_v22 }
 0x49a   : > { %868 = vadd.xlane.f32.xlu0 %v867_v23 }
 0x49e   : > { %492 = vadd.xlane.f32.xlu0 %v491_v24 }
 0x4a6   : > { %v736_v25 = vpop.xlane.xlu1 %735 }
 0x4a7   : > { %v737_v26 = vsub.f32 %v728_v57, %v736_v25 }
 0x4a9   : > { %v738_v27 = vmul.f32 1.442695, %v737_v26 }
 0x4aa   : > { %v746_v28 = vpop.permute.xlu1 %745 }
 0x4ab   : > { %1355 = vpow2.f32 %v738_v27  ;;  %v751_v29 = vsel %vm501_vm4, %v746_v28, 0 }
 0x4ac   : > { %1211 = vmatpush3.bf16.msra.mxu0 %v751_v29 }
 0x4ad   : > { %1222 = vmatprep.subr.bf16.mxu0 %v1544_v9 }
 0x4ae   : > { %v873_v31 = vpop.permute.xlu1 %872 }
 0x4af   : > { %v878_v34 = vsel %vm501_vm4, %v873_v31, 0 }
 0x4b5   : > { %v1356_v30 = vpop.eup %1355 }
 0x4b6   : > { %v740_v32 = vsel %vm438_vm3, %v1356_v30, 0.0  ;;  %v744_v33 = vpack.c.bf16 %v1356_v30, %v1356_v30 }
 0x4b7   : > { %741 = vadd.xlane.f32.xlu1 %v740_v32 }
 0x4b8   : > { %1213 = vmatmul.mubr.msk.bf16.vlgmr.msra.gmra.mrb[12].mxu0 %vm438_vm3, %v744_v33 }
 0x4b9   : > { %1223 = vmatpush3.bf16.msra.mxu0 %v878_v34  ;;  %1224 = vmatprep.mubr.msk.bf16.mxu0 %vm1545_vm1, %v1544_v9 }
 0x4c0   : > { %1225 = vmatmul.mubr.msk.bf16.vlgmr.msra.gmra.mrb[16].mxu0 %vm438_vm3, %v871_v35 }
 0x517   : > { %v615_v36 = vpop.xlane.xlu0 %614 }
 0x527   : > { %v869_v37 = vpop.xlane.xlu0 %868 }
 0x52b   : > { %v493_v38 = vpop.xlane.xlu0 %492 }
 0x52c   : > { %1357 = vrcp.f32 %v493_v38 }
 0x52d   : > { %1359 = vrcp.f32 %v615_v36 }
 0x536   : > { %v1358_v39 = vpop.eup %1357 }
 0x537   : > { %v1360_v46 = vpop.eup %1359 }
 0x544   : > { %v742_v53 = vpop.xlane.xlu1 %741 }
 0x545   : > { %1361 = vrcp.f32 %v742_v53 }
 0x546   : > { %1363 = vrcp.f32 %v869_v37 }
 0x54f   : > { %v1362_v54 = vpop.eup %1361 }
 0x550   : > { %v1364_v63 = vpop.eup %1363 }
 0x556   : > { %v539_v40 = vpop.f32.mrb[4].mxu0 }
 0x557   : > { %v545_v41 = vmul.f32 %v1358_v39, %v539_v40  ;;  %v1190_v42 = vpop.f32.mrb[5].mxu0 }
 0x558   : > { %v542_v43 = vpop.f32.mrb[6].mxu0 }
 0x559   : > { %v546_v44 = vpack.c.bf16 %v545_v41, %v545_v41  ;;  %v1191_v45 = vpop.f32.mrb[7].mxu0 }
 0x55b   : > { %548 = vst.msk [vmem:[#allocation3] sm:$0xf] %vm547_vm5, %v546_v44 }
 0x565   : > { %v660_v47 = vpop.f32.mrb[8].mxu0 }
 0x566   : > { %v666_v48 = vmul.f32 %v1360_v46, %v660_v47  ;;  %v1202_v49 = vpop.f32.mrb[9].mxu0 }
 0x567   : > { %v663_v50 = vpop.f32.mrb[10].mxu0 }
 0x568   : > { %v1147_v51 = vpack.c.bf16 %v666_v48, %v666_v48  ;;  %v1203_v52 = vpop.f32.mrb[11].mxu0 }
 0x56a   : > { %671 = vrot.lane.b32.xlu1 %v1147_v51, %s1557_s10 }
 0x58b   : > { %v787_v55 = vpop.f32.mrb[12].mxu0 }
 0x58c   : > { %v793_v57 = vmul.f32 %v1362_v54, %v787_v55  ;;  %v1214_v58 = vpop.f32.mrb[13].mxu0 }
 0x58d   : > { %v790_v59 = vpop.f32.mrb[14].mxu0 }
 0x58e   : > { %v1148_v61 = vpack.c.bf16 %v793_v57, %v793_v57  ;;  %v1215_v62 = vpop.f32.mrb[15].mxu0 }
 0x590   : > { %798 = vrot.lane.b32.xlu0 %v1148_v61, %s1558_s14  ;;  %s1457_s14 = scalar_lea.vmem %s1456_s8, 256 }
 0x591   : > { %p1459_p2 = scmp.lt.s32.totalorder %s1457_s14, %s1451_s12 }
 0x593   : > { %v914_v0 = vpop.f32.mrb[16].mxu0  ;;  %p1460_p3 = por %p1459_p2, %p1458_p9 }
 0x594   : > { %v920_v1 = vmul.f32 %v1364_v63, %v914_v0  ;;  %v1226_v2 = vpop.f32.mrb[17].mxu0 }
 0x595   : > { %v917_v3 = vpop.f32.mrb[18].mxu0  ;;  %p1461_p6 = pnand %p1460_p3, %p1454_p1 }
 0x596   : > { %v1149_v4 = vpack.c.bf16 %v920_v1, %v920_v1  ;;  %v1227_v5 = vpop.f32.mrb[19].mxu0 }
 0x598   : > { %925 = vrot.lane.b32.xlu1 %v1149_v4, %s1559_s19 }
 0x5dc   : > { %v672_v6 = vpop.permute.xlu1 %671 }
 0x5dd   : > { %675 = vst.msk [vmem:[#allocation3] sm:$0xf] %vm674_vm6, %v672_v6 }
 0x602   : > { %v799_v7 = vpop.permute.xlu0 %798 }
 0x603   : > { %802 = vst.msk [vmem:[#allocation3] sm:$0xf] %vm801_vm7, %v799_v7 }
 0x60a   : > { %v926_v9 = vpop.permute.xlu1 %925 }
 0x60b   : > { %929 = vst.msk [vmem:[#allocation3] sm:$0xf] %vm928_vm8, %v926_v9 }
 0x612   : > { %v930_v8 = vld [vmem:[#allocation3] sm:$0xf] }
 0x613   : > { %1233 = vmatmul.mubr.msk.bf16.vlgmr.msra.gmra.mrb[16].mxu1 %vm325_vm0, %v930_v8 }
 0x6e6   : > { %v992_v11 = vpop.f32.mrb[16].mxu1 }
 0x6e7   : > { %v993_v12 = vadd.f32 %v1139_v10, %v992_v11  ;;  %v1234_v13 = vpop.f32.mrb[17].mxu1 }
 0x6e8   : > { %v995_v14 = vpop.f32.mrb[18].mxu1 }
 0x6e9   : > { %v1235_v15 = vpop.f32.mrb[19].mxu1  ;;  %998 = vst.msk [vmem:[%s317_s30] sm:$0xff] %vm325_vm0, %v993_v12 }
 0x6ea   : > { %1464 = shalt.err (!%p1461_p6)
}
 0x6eb   : > { %s1465_s19 = scalar_lea.hbm %s1869_s11, 128  ;;  %s1469_s9 = scalar_lea.hbm %s1924_s7, 256 }
 0x6ec   : > { %p1466_p10 = scmp.ne.s32.totalorder %s1869_s11, %s1465_s19  ;;  %p1470_p12 = scmp.lt.u32.totalorder %s1869_s11, %s1924_s7 }
 0x6ed   : > { %p1471_p13 = scmp.lt.u32.totalorder %s1469_s9, %s1465_s19  ;;  %p1473_p8 = scmp.lt.u32.totalorder %s1465_s19, %s1869_s11 }
 0x6ee   : > { %p1467_p11 = pnand %p1466_p10, %p1956_p0 }
 0x6ef   : > { %p1472_p5 = por %p1471_p13, %p1470_p12 }
 0x6f0   : > { %p1468_p7 = pneg %p1467_p11 }
 0x6f1   : > { %p1474_p4 = por %p1473_p8, %p1472_p5 }
 0x6f3   : > { %p1475_p1 = pnand %p1474_p4, %p1468_p7 }
 0x6f5   : > { %1478 = shalt.err (!%p1475_p1)
}
 0x6f6   : > { %1246 = dma.vmem_to_hbm [thread:$0]  (%p1956_p0), %s1871_s13, 128, %s1869_s11, %s1000_s27  }
 0x6f7 PF: > { %p1266_p9 = scmp.ge.s32.totalorder %s1537_s29, 2  ;;  %s1026_s30 = sand.u32 1, %s1517_s24  }
 0x6f8   : > { %p1957_p2 = scmp.ne.s32.totalorder %s1946_s18, 0  ;;  %s1027_s3 = scalar_lea.sflag [#allocation6], %s1026_s30 }
 0x6fa   : > { %p1259_p3 = pnand %p1266_p9, %p1957_p2 }
 0x6fc   : > { %1512 = dma.done.wait (!%p1259_p3), %s1027_s3, 128  }
 0x6fd   : > { %1514 = vsyncadd (!%p1259_p3), %s1027_s3, 4294967168  ;;  %s22_s29 = sadd.s32 1, %s1537_s29   ;;  %s1958_s17 = sld [smem:[#allocation14_spill]] }
 0x6fe   : > { %p19_p6 = scmp.ge.s32.totalorder %s22_s29, 4   ;;  %s1959_s24 = smov %s1521_s25 }
 0x6ff   : > { %s1960_s25 = smov %s1525_s26  ;;  %s1961_s26 = smov %s1706_s20 }
 0x700   : > { %s1962_s27 = smov %s1533_s28  ;;  %21 = sbr.rel (!%p19_p6) target bundleno = 8 (0x8), region = 99 }
 0x703   : > { %s1963_s28 = smov %s1958_s17 }
 0x707   :  { %1032 = vsyncpa [#allocation5], 1 }
 0x708   :  { %1034 = vsyncpa [#allocation5 + $0x1], 1 }
 0x709   :  { %1035 = vsyncpa [#allocation8], 1 }
 0x70a   :  { %1036 = vsyncpa [#allocation6], 1 }
 0x70b   :  { %1038 = vsyncpa [#allocation6 + $0x1], 1 }

// kernel: tpu_custom_call.1
= control target key start
LH: loop header
LB: loop body
LE: loop exit
PB: predicated region body
PF: predicated region fallthrough
CT: control target
= control target key end

     0   :  { %12 = vsyncpa [#allocation5], 0  ;;  %s1975_s0 = inlined_call_operand.hbm [shape: bf16[2,8,32], index: 0, kind: input, shape index: {}]   ;;  %s1976_s1 = inlined_call_operand.vmem [shape: f32[1,32], index: 1, kind: input, shape index: {}]   ;;  %s1977_s2 = inlined_call_operand.vmem [shape: f32[1,32], index: 2, kind: input, shape index: {}]   ;;  %s1978_s3 = inlined_call_operand.hbm [shape: bf16[32,96], index: 3, kind: input, shape index: {}]   ;;  %s1979_s4 = inlined_call_operand.hbm [shape: f32[1,96], index: 4, kind: input, shape index: {}]   ;;  %s1980_s5 = inlined_call_operand.vmem [shape: bf16[32,32], index: 5, kind: input, shape index: {}]   ;;  %s1981_s6 = inlined_call_operand.vmem [shape: f32[1,32], index: 6, kind: input, shape index: {}]   ;;  %s1982_s7 = inlined_call_operand.hbm [shape: f32[2,8,32], index: 7, kind: output, shape index: {}]  }
   0x1   :  { %14 = vsyncpa [#allocation5 + $0x1], 0 }
   0x2   :  { %15 = vsyncpa [#allocation8], 0 }
   0x3   :  { %16 = vsyncpa [#allocation6], 0 }
   0x4   :  { %18 = vsyncpa [#allocation6 + $0x1], 0  ;;  %s1631_s24 = smov 0   ;;  %s1633_s25 = smov 0  }
   0x5   :  { %s1635_s26 = smov 0   ;;  %s1637_s27 = smov 0  }
   0x6   :  { %s1639_s28 = smov 0   ;;  %s1641_s29 = smov 0  }
   0x7 LB: > { %1989 = sst [smem:[#allocation14_spill]] %s1547_s24  ;;  %s1131_s30 = sadd.s32 4294967295, %s1567_s29   ;;  %s1567_s29 = sphi %s1641_s29, %s24_s29   ;;  %s1563_s28 = sphi %s1639_s28, %s2010_s28   ;;  %s1559_s27 = sphi %s1637_s27, %s2009_s27   ;;  %s1555_s26 = sphi %s1635_s26, %s2008_s26   ;;  %s1551_s25 = sphi %s1633_s25, %s2007_s25   ;;  %s1547_s24 = sphi %s1631_s24, %s2006_s24  }
   0x8   : > { %s1132_s8 = sadd.s32 4294967294, %s1567_s29   ;;  %p56_p0 = scmp.ne.s32.totalorder %s1551_s25, %s1547_s24 }
   0x9   : > { %p1665_p1 = scmp.eq.s32.totalorder %s1131_s30, 0  ;;  %p1669_p2 = scmp.eq.s32.totalorder %s1131_s30, 1 }
   0xa   : > { %p214_p3 = scmp.eq.s32.totalorder %s1132_s8, 1  ;;  %p1133_p5 = scmp.ge.s32.totalorder %s1567_s29, 1 }
   0xb   : > { %s1990_s9 = scalar_select %p1665_p1, 1, 0 }
   0xc   : > { %p1675_p4 = por %p1665_p1, %p56_p0  ;;  %p1680_p6 = por %p214_p3, %p56_p0 }
   0xd   : > { %p221_p7 = scmp.lt.s32.totalorder %s1567_s29, 3  ;;  %s1569_s14 = smov [#allocation7]  }
   0xe   : > { %s1992_s11 = scalar_select %p1675_p4, 1, 0 }
   0xf   : > { %s1993_s12 = scalar_select %p1680_p6, 1, 0 }
  0x10   : > { %p1685_p8 = pnand %p1133_p5, %p221_p7  ;;  %s239_s15 = sshll.u32 %s1569_s14, 4  ;;  %s1689_s15 = int_to_ptr.vmem [resolvable:$true] %s239_s15 }
  0x11   : > { %1994 = sst [smem:[#allocation15_spill]] %s1993_s12  ;;  %s1570_s17 = smov [#allocation9]  }
  0x12   : > { %p1277_p9 = pneg %p1685_p8  ;;  %s253_s18 = sshll.u32 %s1570_s17, 4  ;;  %s1700_s18 = int_to_ptr.vmem [resolvable:$true] %s253_s18 }
  0x13   : > { %s1395_s21 = scalar_lea.hbm %s1978_s3, 256 }
  0x14   : > { %p1696_p11 = pnand %p1277_p9, %p1665_p1  ;;  %p1396_p12 = scmp.ne.s32.totalorder %s1978_s3, %s1395_s21 }
  0x15   : > { %p1402_p5 = scmp.lt.u32.totalorder %s1395_s21, %s1978_s3 }
  0x16   : > { %p1397_p13 = pneg %p1696_p11 }
  0x18   : > { %p1398_p0 = pnand %p1397_p13, %p1396_p12 }
  0x1a   : > { %p1399_p3 = pneg %p1398_p0 }
  0x1c   : > { %p1404_p7 = pnand %p1402_p5, %p1399_p3 }
  0x1e   : > { %1407 = shalt.err (!%p1404_p7)
}
  0x1f   : > { %s1408_s14 = scalar_lea.vmem %s1689_s15, 256  ;;  %p1416_p1 = scmp.lt.s32.totalorder %s1689_s15, %s1689_s15 }
  0x20   : > { %p1409_p9 = scmp.ne.s32.totalorder %s1689_s15, %s1408_s14  ;;  %p1417_p12 = scmp.lt.s32.totalorder %s1408_s14, %s1408_s14 }
  0x22   : > { %p1411_p10 = pnand %p1409_p9, %p1397_p13  ;;  %p1418_p0 = por %p1417_p12, %p1416_p1 }
  0x24   : > { %p1412_p6 = pneg %p1411_p10 }
  0x26   : > { %p1419_p4 = pnand %p1418_p0, %p1412_p6 }
  0x28   : > { %1422 = shalt.err (!%p1419_p4)
}
  0x29   : > { %s1571_s17 = smov 64   ;;  %s1572_s19 = smov 4  }
  0x2a   : > { %1280 = dma.hbm_to_vmem [thread:$0]  (!%p1696_p11), %s1978_s3, 256, %s1689_s15, [#allocation8], %s1571_s17, %s1571_s17, %s1572_s19  }
  0x2b   : > { %s1423_s30 = scalar_lea.hbm %s1979_s4, 16 }
  0x2c   : > { %p1424_p1 = scmp.ne.s32.totalorder %s1979_s4, %s1423_s30  ;;  %p1430_p10 = scmp.lt.u32.totalorder %s1423_s30, %s1979_s4 }
  0x2e   : > { %p1426_p4 = pnand %p1424_p1, %p1397_p13 }
  0x30   : > { %p1427_p6 = pneg %p1426_p4 }
  0x32   : > { %p1432_p3 = pnand %p1430_p10, %p1427_p6 }
  0x34   : > { %1435 = shalt.err (!%p1432_p3)
}
  0x35   : > { %s1436_s15 = scalar_lea.vmem %s1700_s18, 16  ;;  %s1443_s12 = scalar_lea.vmem %s1700_s18, 32 }
  0x36   : > { %p1437_p5 = scmp.ne.s32.totalorder %s1700_s18, %s1436_s15  ;;  %p1444_p12 = scmp.lt.s32.totalorder %s1700_s18, %s1700_s18 }
  0x37   : > { %p1445_p0 = scmp.lt.s32.totalorder %s1443_s12, %s1436_s15 }
  0x38   : > { %p1439_p7 = pnand %p1437_p5, %p1397_p13 }
  0x39   : > { %p1446_p1 = por %p1445_p0, %p1444_p12 }
  0x3a   : > { %p1440_p9 = pneg %p1439_p7 }
  0x3c   : > { %p1447_p4 = pnand %p1446_p1, %p1440_p9 }
  0x3e   : > { %1450 = shalt.err (!%p1447_p4)
}
  0x3f   : > { %1283 = dma.hbm_to_vmem [thread:$0]  (!%p1696_p11), %s1979_s4, 16, %s1700_s18, [#allocation8]  }
  0x40   : > { %s36_s19 = sadd.s32 1, %s1563_s28  ;;  %s43_s20 = sadd.s32 1, %s1555_s26 }
  0x41   : > { %p38_p13 = scmp.ge.s32.totalorder %s36_s19, 2  ;;  %p50_p6 = scmp.ne.s32.totalorder %s1555_s26, %s1551_s25 }
  0x42   : > { %p51_p10 = scmp.eq.s32.totalorder %s1567_s29, 0  ;;  %p1294_p3 = scmp.lt.s32.totalorder %s1567_s29, 2 }
  0x43   : > { %s2012_s19 = smov (%p38_p13, %s36_s19), 0  ;;  %p1765_p7 = por %p1669_p2, %p50_p6 }
  0x44   : > { %p52_p5 = por %p51_p10, %p50_p6  ;;  %s40_s21 = ssub.s32 %s1563_s28, %s2012_s19 }
  0x45   : > { %s1997_s16 = scalar_select %p1765_p7, 1, 0 }
  0x46   : > { %s270_s22 = sand.u32 1, %s1555_s26   ;;  %p41_p9 = scmp.eq.s32.totalorder %s40_s21, 0 }
  0x47   : > { %s1137_s18 = sshll.u32 %s270_s22, 2  ;;  %s1138_s23 = sshll.u32 %s1563_s28, 6 }
  0x48   : > { %s1774_s30 = scalar_select %p41_p9, %s1555_s26, %s43_s20  }
  0x49   : > { %s1779_s15 = scalar_lea.hbm %s1975_s0, %s1138_s23  ;;  %s274_s10 = scalar_lea.vmem [#allocation4], %s1137_s18 }
  0x4a   : > { %s281_s12 = sshll.u32 %s274_s10, 4  ;;  %p1783_p2 = pnand %p1294_p3, %p52_p5  ;;  %s1787_s12 = int_to_ptr.vmem [resolvable:$true] %s281_s12 }
  0x4b   : > { %s271_s17 = scalar_lea.sflag [#allocation5], %s270_s22  ;;  %s1451_s20 = scalar_lea.hbm %s1779_s15, 64 }
  0x4c   : > { %p1452_p11 = scmp.ne.s32.totalorder %s1779_s15, %s1451_s20  ;;  %p1453_p12 = pneg %p1783_p2 }
  0x4d   : > { %s1456_s23 = scalar_lea.hbm %s1975_s0, 128  ;;  %p1457_p4 = scmp.lt.u32.totalorder %s1779_s15, %s1975_s0 }
  0x4e   : > { %p1454_p0 = pnand %p1453_p12, %p1452_p11  ;;  %p1458_p13 = scmp.lt.u32.totalorder %s1456_s23, %s1451_s20 }
  0x4f   : > { %p1460_p10 = scmp.lt.u32.totalorder %s1451_s20, %s1779_s15 }
  0x50   : > { %p1455_p1 = pneg %p1454_p0  ;;  %p1459_p6 = por %p1458_p13, %p1457_p4 }
  0x52   : > { %p1461_p3 = por %p1460_p10, %p1459_p6 }
  0x54   : > { %p1462_p5 = pnand %p1461_p3, %p1455_p1 }
  0x56   : > { %1465 = shalt.err (!%p1462_p5)
}
  0x57   : > { %s1466_s22 = scalar_lea.vmem %s1787_s12, 64  ;;  %s1573_s10 = smov [#allocation4]  }
  0x58   : > { %p1467_p9 = scmp.ne.s32.totalorder %s1787_s12, %s1466_s22  ;;  %s1471_s21 = sshll.u32 %s1573_s10, 4  ;;  %s1472_s21 = int_to_ptr.vmem [resolvable:$false] %s1471_s21 }
  0x59   : > { %s1473_s18 = scalar_lea.vmem %s1472_s21, 128  ;;  %p1474_p7 = scmp.lt.s32.totalorder %s1787_s12, %s1472_s21 }
  0x5a   : > { %p1469_p11 = pnand %p1467_p9, %p1453_p12  ;;  %p1475_p4 = scmp.lt.s32.totalorder %s1473_s18, %s1466_s22 }
  0x5c   : > { %p1470_p0 = pneg %p1469_p11  ;;  %p1476_p13 = por %p1475_p4, %p1474_p7 }
  0x5e   : > { %p1477_p6 = pnand %p1476_p13, %p1470_p0 }
  0x60   : > { %1480 = shalt.err (!%p1477_p6)
}
  0x61   : > { %1287 = dma.hbm_to_vmem [thread:$0]  (!%p1783_p2), %s1779_s15, 64, %s1787_s12, %s271_s17  }
  0x62   : > { %290 = sbr.rel (%p1685_p8) target bundleno = 1775 (0x6ef), region = 48  ;;  %s1817_s20 = sand.u32 (!%p1685_p8), 1, %s1551_s25  }
  0x63   : > { %s1140_s23 = sshll.u32 (!%p1685_p8), %s1817_s20, 2  ;;  %s293_s8 = scalar_lea.sflag (!%p1685_p8), [#allocation5], %s1817_s20 }
  0x64   : > { %s296_s14 = scalar_lea.vmem (!%p1685_p8), [#allocation4], %s1140_s23  ;;  %p1999_p7 = scmp.ne.s32.totalorder (!%p1685_p8), %s1992_s11, 0 }
  0x69   : > { %1534 = dma.done.wait (%p1999_p7), %s293_s8, 64  }
  0x6a   : > { %1536 = vsyncadd (%p1999_p7), %s293_s8, 4294967232  ;;  %p2000_p12 = scmp.ne.s32.totalorder %s1990_s9, 0 }
  0x6c   : > { %1538 = dma.done.wait (%p2000_p12), [#allocation8], 272  }
  0x6d   : > { %1540 = vsyncadd (%p2000_p12), [#allocation8], 4294967024  ;;  %vm342_vm0 = vcmask 261120   ;;  %v340_v0 = vld [vmem:[%s296_s14] sm:$0xf]  ;;  %v1366_v8 = vld [vmem:[#allocation7] sm:$0xff]  }
  0x6e   : > { %v341_v1 = vunpack.c.l.bf16 %v340_v0  ;;  %v1574_v9 = vmov 0.0   ;;  %vm1575_vm1 = vmmov 0   ;;  %v1367_v10 = vld [vmem:[#allocation7 + $0x8] sm:$0xff]   ;;  %v1144_v15 = vld [vmem:[%s1976_s1] ss:$0 sm:$0xff]  ;;  %vm441_vm2 = vcmask 781312  }
  0x6f   : > { %1201 = vmatprep.subr.bf16.mxu0 %v1574_v9  ;;  %1205 = vmatprep.mubr.msk.bf16.mxu0 %vm1575_vm1, %v1574_v9  ;;  %v1145_v17 = vld [vmem:[%s1977_s2] ss:$0 sm:$0xff]  ;;  %v1146_v21 = vld [vmem:[#allocation9] ss:$0 sm:$0xff]  ;;  %s1576_s12 = smov 120   ;;  %s1577_s24 = smov 96  }
  0x70   : > { %v343_v2 = vsel %vm342_vm0, %v341_v1, 0.0  ;;  %1202 = vmatpush3.bf16.msra.mxu0 %v1366_v8  ;;  %1209 = vmatprep.subr.bf16.mxu1 %v1574_v9  ;;  %s1578_s17 = smov 88   ;;  %s1579_s22 = smov 80   ;;  %vm455_vm3 = vcmask 64512   ;;  %vm518_vm4 = vcmask 1043456   ;;  %vm564_vm5 = vcmask 60416  }
  0x71   : > { %344 = vadd.xlane.f32.xlu0 %v343_v2  ;;  %1203 = vmatprep.subr.bf16.mxu0 %v1574_v9  ;;  %s1580_s10 = smov 112   ;;  %s1581_s21 = smov 72   ;;  %vm691_vm6 = vcmask 126016   ;;  %vm818_vm7 = vcmask 191616   ;;  %vm945_vm8 = vcmask 257216  }
  0x72   : > { %1211 = vmatprep.mubr.msk.bf16.mxu1 %vm1575_vm1, %v1574_v9  ;;  %s1582_s18 = smov 104   ;;  %s1583_s23 = smov 64  }
  0x73   : > { %s1584_s8 = smov 56   ;;  %s1585_s14 = smov 48  }
  0x74   : > { %1204 = vmatpush3.bf16.msra.mxu0 %v1367_v10  ;;  %s1586_s9 = smov 40   ;;  %s1587_s11 = smov 8  }
  0x75   : > { %1215 = vmatprep.subr.bf16.mxu0 %v1574_v9  ;;  %p2001_p2 = scmp.ne.s32.totalorder %s1997_s16, 0 }
  0xfe   : > { %v345_v3 = vpop.xlane.xlu0 %344 }
  0xff   : > { %v347_v4 = vmul.f32 0.03125, %v345_v3 }
 0x101   : > { %v348_v5 = vsub.f32 %v341_v1, %v347_v4 }
 0x103   : > { %v349_v6 = vmul.f32 %v348_v5, %v348_v5 }
 0x105   : > { %v350_v7 = vsel %vm342_vm0, %v349_v6, 0.0 }
 0x106   : > { %351 = vadd.xlane.f32.xlu0 %v350_v7 }
 0x193   : > { %v352_v11 = vpop.xlane.xlu0 %351 }
 0x194   : > { %v353_v12 = vmul.f32 0.03125, %v352_v11 }
 0x196   : > { %v354_v13 = vadd.f32 1e-05, %v353_v12 }
 0x198   : > { %1377 = vrsqrt.f32 %v354_v13 }
 0x1a2   : > { %v1378_v14 = vpop.eup %1377 }
 0x1a3   : > { %v356_v16 = vmul.f32 %v1378_v14, %v348_v5 }
 0x1a5   : > { %v364_v18 = vmul.f32 %v1144_v15, %v356_v16 }
 0x1a7   : > { %v372_v19 = vadd.f32 %v1145_v17, %v364_v18 }
 0x1a9   : > { %v373_v20 = vpack.c.bf16 %v372_v19, %v372_v19 }
 0x1ab   : > { %1206 = vmatmul.mubr.msk.bf16.vlgmr.msra.gmra.mrb[0].mxu0 %vm342_vm0, %v373_v20 }
 0x1ac   : > { %1217 = vmatprep.mubr.msk.bf16.mxu0 %vm1575_vm1, %v1574_v9 }
 0x27e   : > { %v434_v22 = vpop.f32.mrb[0].mxu0 }
 0x27f   : > { %v435_v23 = vadd.f32 %v1146_v21, %v434_v22  ;;  %v1207_v24 = vpop.f32.mrb[1].mxu0 }
 0x280   : > { %v437_v25 = vpop.f32.mrb[2].mxu0 }
 0x281   : > { %v440_v26 = vpack.c.bf16 %v435_v23, %v435_v23  ;;  %v1208_v27 = vpop.f32.mrb[3].mxu0 }
 0x283   : > { %442 = vst.msk [vmem:[#allocation2] sm:$0xf] %vm441_vm2, %v440_v26 }
 0x28a   : > { %v1368_v28 = vld [vmem:[#allocation2] ss:$0 sps:$4 sm:$0xff]  }
 0x28b   : > { %v1848_v29 = vld [vmem:[#allocation2] ss:$0 sps:$4 sm:$0xff]   ;;  %571 = vrot.lane.b32.xlu0 %v1368_v28, %s1576_s12  ;;  %s1590_s12 = smov [#allocation10]  }
 0x28c   : > { %453 = vrot.lane.b32.xlu1 %v1848_v29, %s1577_s24  ;;  %v1851_v30 = vld [vmem:[#allocation2] ss:$0 sps:$4 sm:$0xff]   ;;  %s1485_s24 = sshll.u32 %s1590_s12, 4  ;;  %s1486_s24 = int_to_ptr.vmem [resolvable:$false] %s1485_s24 }
 0x28d   : > { %v1854_v31 = vld [vmem:[#allocation2] ss:$0 sps:$4 sm:$0xff]  }
 0x28e   : > { %v1372_v32 = vld [vmem:[#allocation2] ss:$0 sps:$4 sm:$0xff]  }
 0x28f   : > { %v1857_v33 = vld [vmem:[#allocation2] ss:$0 sps:$4 sm:$0xff]  }
 0x290   : > { %576 = vrot.lane.b32.xlu1 %v1851_v30, %s1578_s17  ;;  %v1374_v34 = vld [vmem:[#allocation2] ss:$0 sps:$4 sm:$0xff]   ;;  %s1588_s17 = smov 16  }
 0x291   : > { %v448_v38 = vld [vmem:[#allocation2] sm:$0xf] }
 0x294   : > { %703 = vrot.lane.b32.xlu1 %v1854_v31, %s1579_s22  ;;  %s1589_s22 = smov 24  }
 0x298   : > { %698 = vrot.lane.b32.xlu1 %v1372_v32, %s1580_s10  ;;  %s1143_s10 = sshll.u32 %s1817_s20, 3 }
 0x29c   : > { %830 = vrot.lane.b32.xlu1 %v1857_v33, %s1581_s21 }
 0x2a0   : > { %825 = vrot.lane.b32.xlu1 %v1374_v34, %s1582_s18 }
 0x2fd   : > { %v572_v41 = vpop.permute.xlu0 %571 }
 0x2fe   : > { %v454_v35 = vpop.permute.xlu1 %453 }
 0x2ff   : > { %v460_v36 = vsel %vm455_vm3, %v454_v35, 0 }
 0x300   : > { %1210 = vmatpush3.bf16.xpose.msra.mxu1 %v460_v36 }
 0x301   : > { %1221 = vmatprep.subr.bf16.mxu1 %v1574_v9 }
 0x302   : > { %v577_v37 = vpop.permute.xlu1 %576 }
 0x303   : > { %v582_v39 = vsel %vm455_vm3, %v577_v37, 0 }
 0x306   : > { %v704_v40 = vpop.permute.xlu1 %703 }
 0x307   : > { %1212 = vmatmul.mubr.msk.bf16.vlgmr.msra.gmra.mrb[0].mxu1 %vm455_vm3, %v448_v38  ;;  %v709_v43 = vsel %vm455_vm3, %v704_v40, 0 }
 0x308   : > { %1222 = vmatpush3.bf16.xpose.msra.mxu1 %v582_v39  ;;  %1223 = vmatprep.mubr.msk.bf16.mxu1 %vm1575_vm1, %v1574_v9 }
 0x309   : > { %1233 = vmatprep.subr.bf16.mxu1 %v1574_v9 }
 0x30a   : > { %v699_v42 = vpop.permute.xlu1 %698 }
 0x30e   : > { %v831_v44 = vpop.permute.xlu1 %830 }
 0x30f   : > { %1224 = vmatmul.mubr.msk.bf16.vlgmr.msra.gmra.mrb[4].mxu1 %vm455_vm3, %v572_v41  ;;  %v836_v45 = vsel %vm455_vm3, %v831_v44, 0 }
 0x310   : > { %1234 = vmatpush3.bf16.xpose.msra.mxu1 %v709_v43  ;;  %1235 = vmatprep.mubr.msk.bf16.mxu1 %vm1575_vm1, %v1574_v9 }
 0x311   : > { %1245 = vmatprep.subr.bf16.mxu1 %v1574_v9 }
 0x312   : > { %v826_v46 = vpop.permute.xlu1 %825 }
 0x317   : > { %1236 = vmatmul.mubr.msk.bf16.vlgmr.msra.gmra.mrb[8].mxu1 %vm455_vm3, %v699_v42 }
 0x318   : > { %1246 = vmatpush3.bf16.xpose.msra.mxu1 %v836_v45  ;;  %1247 = vmatprep.mubr.msk.bf16.mxu1 %vm1575_vm1, %v1574_v9 }
 0x319   : > { %1257 = vmatprep.subr.bf16.mxu1 %v1574_v9 }
 0x31f   : > { %1248 = vmatmul.mubr.msk.bf16.vlgmr.msra.gmra.mrb[12].mxu1 %vm455_vm3, %v826_v46 }
 0x320   : > { %1261 = vmatprep.mubr.msk.bf16.mxu1 %vm1575_vm1, %v1574_v9 }
 0x3da   : > { %v496_v47 = vpop.f32.mrb[0].mxu1 }
 0x3db   : > { %v1213_v48 = vpop.f32.mrb[1].mxu1  ;;  %v502_v49 = vsel %vm455_vm3, %v496_v47, -inf }
 0x3dc   : > { %503 = vmax.xlane.f32.xlu1 %v502_v49  ;;  %v499_v50 = vpop.f32.mrb[2].mxu1 }
 0x3dd   : > { %v1214_v51 = vpop.f32.mrb[3].mxu1 }
 0x3e2   : > { %v618_v52 = vpop.f32.mrb[4].mxu1 }
 0x3e3   : > { %v1225_v53 = vpop.f32.mrb[5].mxu1  ;;  %v624_v54 = vsel %vm455_vm3, %v618_v52, -inf }
 0x3e4   : > { %625 = vmax.xlane.f32.xlu0 %v624_v54  ;;  %v621_v55 = vpop.f32.mrb[6].mxu1 }
 0x3e5   : > { %v1226_v56 = vpop.f32.mrb[7].mxu1 }
 0x3e6   : > { %v1375_v56 = vld [vmem:[%s1980_s5] sm:$0xff]  }
 0x3e7   : > { %1258 = vmatpush3.bf16.msra.mxu1 %v1375_v56 }
 0x3e8   : > { %1259 = vmatprep.subr.bf16.mxu1 %v1574_v9 }
 0x3ea   : > { %v745_v57 = vpop.f32.mrb[8].mxu1 }
 0x3eb   : > { %v1237_v58 = vpop.f32.mrb[9].mxu1  ;;  %v751_v2 = vsel %vm455_vm3, %v745_v57, -inf }
 0x3ec   : > { %v748_v59 = vpop.f32.mrb[10].mxu1 }
 0x3ed   : > { %513 = vrot.lane.b32.xlu1 %v1848_v29, %s1583_s23  ;;  %v1238_v60 = vpop.f32.mrb[11].mxu1  ;;  %s1173_s23 = sshll.u32 %s1559_s27, 7  ;;  %s1017_s27 = scalar_lea.sflag [#allocation6], %s1817_s20 }
 0x3ee   : > { %v1376_v60 = vld [vmem:[%s1980_s5 + $0x8] sm:$0xff]   ;;  %s1925_s13 = scalar_lea.hbm %s1982_s7, %s1173_s23 }
 0x3ef   : > { %1260 = vmatpush3.bf16.msra.mxu1 %v1376_v60 }
 0x3f2   : > { %v872_v61 = vpop.f32.mrb[12].mxu1 }
 0x3f3   : > { %v1249_v62 = vpop.f32.mrb[13].mxu1  ;;  %v878_v63 = vsel %vm455_vm3, %v872_v61, -inf }
 0x3f4   : > { %879 = vmax.xlane.f32.xlu0 %v878_v63  ;;  %v875_v0 = vpop.f32.mrb[14].mxu1 }
 0x3f5   : > { %v1250_v1 = vpop.f32.mrb[15].mxu1 }
 0x40a   : > { %635 = vrot.lane.b32.xlu0 %v1851_v30, %s1584_s8  ;;  %s334_s8 = scalar_lea.vmem [#allocation10], %s1143_s10 }
 0x411   : > { %752 = vmax.xlane.f32.xlu1 %v751_v2 }
 0x422   : > { %762 = vrot.lane.b32.xlu1 %v1854_v31, %s1585_s14  ;;  %s1031_s14 = sshll.u32 %s334_s8, 4  ;;  %s1927_s14 = int_to_ptr.vmem [resolvable:$true] %s1031_s14 }
 0x423   : > { %s1481_s15 = scalar_lea.vmem %s1927_s14, 128  ;;  %p1488_p3 = scmp.lt.s32.totalorder %s1927_s14, %s1486_s24 }
 0x424   : > { %p1482_p8 = scmp.ne.s32.totalorder %s1927_s14, %s1481_s15 }
 0x426   : > { %889 = vrot.lane.b32.xlu1 %v1857_v33, %s1586_s9  ;;  %p1483_p1 = pnand %p1482_p8, %p2001_p2 }
 0x428   : > { %p1484_p10 = pneg %p1483_p1 }
 0x469   : > { %v504_v3 = vpop.xlane.xlu1 %503 }
 0x46a   : > { %v505_v4 = vsub.f32 %v496_v47, %v504_v3 }
 0x46c   : > { %v506_v5 = vmul.f32 1.442695, %v505_v4 }
 0x46d   : > { %v514_v6 = vpop.permute.xlu1 %513 }
 0x46e   : > { %1379 = vpow2.f32 %v506_v5  ;;  %v520_v7 = vsel %vm518_vm4, %v514_v6, 0 }
 0x46f   : > { %1216 = vmatpush3.bf16.msra.mxu0 %v520_v7 }
 0x470   : > { %1227 = vmatprep.subr.bf16.mxu0 %v1574_v9 }
 0x471   : > { %v626_v8 = vpop.xlane.xlu0 %625 }
 0x472   : > { %v627_v10 = vsub.f32 %v618_v52, %v626_v8 }
 0x474   : > { %v628_v11 = vmul.f32 1.442695, %v627_v10  ;;  %v1168_v10 = vld [vmem:[%s1981_s6] ss:$0 sm:$0xff] }
 0x476   : > { %1381 = vpow2.f32 %v628_v11 }
 0x478   : > { %v1380_v12 = vpop.eup %1379 }
 0x479   : > { %v512_v13 = vpack.c.bf16 %v1380_v12, %v1380_v12  ;;  %v508_v24 = vsel %vm455_vm3, %v1380_v12, 0.0 }
 0x47b   : > { %1218 = vmatmul.mubr.msk.bf16.vlgmr.msra.gmra.mrb[4].mxu0 %vm455_vm3, %v512_v13 }
 0x47c   : > { %1229 = vmatprep.mubr.msk.bf16.mxu0 %vm1575_vm1, %v1574_v9 }
 0x480   : > { %v1382_v14 = vpop.eup %1381 }
 0x481   : > { %v880_v15 = vpop.xlane.xlu0 %879  ;;  %v630_v16 = vsel %vm455_vm3, %v1382_v14, 0.0  ;;  %v634_v21 = vpack.c.bf16 %v1382_v14, %v1382_v14 }
 0x482   : > { %v881_v17 = vsub.f32 %v872_v61, %v880_v15  ;;  %631 = vadd.xlane.f32.xlu0 %v630_v16 }
 0x484   : > { %v882_v18 = vmul.f32 1.442695, %v881_v17 }
 0x485   : > { %v636_v19 = vpop.permute.xlu0 %635 }
 0x486   : > { %1383 = vpow2.f32 %v882_v18  ;;  %v641_v20 = vsel %vm518_vm4, %v636_v19, 0 }
 0x487   : > { %1228 = vmatpush3.bf16.msra.mxu0 %v641_v20 }
 0x488   : > { %1239 = vmatprep.subr.bf16.mxu0 %v1574_v9 }
 0x48a   : > { %1230 = vmatmul.mubr.msk.bf16.vlgmr.msra.gmra.mrb[8].mxu0 %vm455_vm3, %v634_v21 }
 0x48b   : > { %1241 = vmatprep.mubr.msk.bf16.mxu0 %vm1575_vm1, %v1574_v9 }
 0x490   : > { %v1384_v22 = vpop.eup %1383 }
 0x491   : > { %v884_v23 = vsel %vm455_vm3, %v1384_v22, 0.0  ;;  %v888_v35 = vpack.c.bf16 %v1384_v22, %v1384_v22 }
 0x492   : > { %885 = vadd.xlane.f32.xlu0 %v884_v23 }
 0x496   : > { %509 = vadd.xlane.f32.xlu0 %v508_v24 }
 0x49e   : > { %v753_v25 = vpop.xlane.xlu1 %752 }
 0x49f   : > { %v754_v26 = vsub.f32 %v745_v57, %v753_v25 }
 0x4a1   : > { %v755_v27 = vmul.f32 1.442695, %v754_v26 }
 0x4a2   : > { %v763_v28 = vpop.permute.xlu1 %762 }
 0x4a3   : > { %1385 = vpow2.f32 %v755_v27  ;;  %v768_v29 = vsel %vm518_vm4, %v763_v28, 0 }
 0x4a4   : > { %1240 = vmatpush3.bf16.msra.mxu0 %v768_v29 }
 0x4a5   : > { %1251 = vmatprep.subr.bf16.mxu0 %v1574_v9 }
 0x4a6   : > { %v890_v31 = vpop.permute.xlu1 %889 }
 0x4a7   : > { %v895_v34 = vsel %vm518_vm4, %v890_v31, 0 }
 0x4ad   : > { %v1386_v30 = vpop.eup %1385 }
 0x4ae   : > { %v757_v32 = vsel %vm455_vm3, %v1386_v30, 0.0  ;;  %v761_v33 = vpack.c.bf16 %v1386_v30, %v1386_v30 }
 0x4af   : > { %758 = vadd.xlane.f32.xlu1 %v757_v32 }
 0x4b0   : > { %1242 = vmatmul.mubr.msk.bf16.vlgmr.msra.gmra.mrb[12].mxu0 %vm455_vm3, %v761_v33 }
 0x4b1   : > { %1252 = vmatpush3.bf16.msra.mxu0 %v895_v34  ;;  %1253 = vmatprep.mubr.msk.bf16.mxu0 %vm1575_vm1, %v1574_v9 }
 0x4b8   : > { %1254 = vmatmul.mubr.msk.bf16.vlgmr.msra.gmra.mrb[16].mxu0 %vm455_vm3, %v888_v35 }
 0x50f   : > { %v632_v36 = vpop.xlane.xlu0 %631 }
 0x51f   : > { %v886_v37 = vpop.xlane.xlu0 %885 }
 0x523   : > { %v510_v38 = vpop.xlane.xlu0 %509 }
 0x524   : > { %1387 = vrcp.f32 %v510_v38 }
 0x525   : > { %1389 = vrcp.f32 %v632_v36 }
 0x52e   : > { %v1388_v39 = vpop.eup %1387 }
 0x52f   : > { %v1390_v46 = vpop.eup %1389 }
 0x53c   : > { %v759_v53 = vpop.xlane.xlu1 %758 }
 0x53d   : > { %1391 = vrcp.f32 %v759_v53 }
 0x53e   : > { %1393 = vrcp.f32 %v886_v37 }
 0x547   : > { %v1392_v54 = vpop.eup %1391 }
 0x548   : > { %v1394_v63 = vpop.eup %1393 }
 0x54e   : > { %v556_v40 = vpop.f32.mrb[4].mxu0 }
 0x54f   : > { %v562_v41 = vmul.f32 %v1388_v39, %v556_v40  ;;  %v1219_v42 = vpop.f32.mrb[5].mxu0 }
 0x550   : > { %v559_v43 = vpop.f32.mrb[6].mxu0 }
 0x551   : > { %v563_v44 = vpack.c.bf16 %v562_v41, %v562_v41  ;;  %v1220_v45 = vpop.f32.mrb[7].mxu0 }
 0x553   : > { %565 = vst.msk [vmem:[#allocation3] sm:$0xf] %vm564_vm5, %v563_v44 }
 0x55d   : > { %v677_v47 = vpop.f32.mrb[8].mxu0 }
 0x55e   : > { %v683_v48 = vmul.f32 %v1390_v46, %v677_v47  ;;  %v1231_v49 = vpop.f32.mrb[9].mxu0 }
 0x55f   : > { %v680_v50 = vpop.f32.mrb[10].mxu0 }
 0x560   : > { %v1176_v51 = vpack.c.bf16 %v683_v48, %v683_v48  ;;  %v1232_v52 = vpop.f32.mrb[11].mxu0 }
 0x562   : > { %688 = vrot.lane.b32.xlu1 %v1176_v51, %s1587_s11 }
 0x583   : > { %v804_v55 = vpop.f32.mrb[12].mxu0 }
 0x584   : > { %v810_v57 = vmul.f32 %v1392_v54, %v804_v55  ;;  %v1243_v58 = vpop.f32.mrb[13].mxu0 }
 0x585   : > { %v807_v59 = vpop.f32.mrb[14].mxu0 }
 0x586   : > { %v1177_v61 = vpack.c.bf16 %v810_v57, %v810_v57  ;;  %v1244_v62 = vpop.f32.mrb[15].mxu0 }
 0x588   : > { %815 = vrot.lane.b32.xlu0 %v1177_v61, %s1588_s17  ;;  %s1487_s17 = scalar_lea.vmem %s1486_s24, 256 }
 0x589   : > { %p1489_p5 = scmp.lt.s32.totalorder %s1487_s17, %s1481_s15 }
 0x58b   : > { %v931_v0 = vpop.f32.mrb[16].mxu0  ;;  %p1490_p9 = por %p1489_p5, %p1488_p3 }
 0x58c   : > { %v937_v1 = vmul.f32 %v1394_v63, %v931_v0  ;;  %v1255_v2 = vpop.f32.mrb[17].mxu0 }
 0x58d   : > { %v934_v3 = vpop.f32.mrb[18].mxu0  ;;  %p1491_p11 = pnand %p1490_p9, %p1484_p10 }
 0x58e   : > { %v1178_v4 = vpack.c.bf16 %v937_v1, %v937_v1  ;;  %v1256_v5 = vpop.f32.mrb[19].mxu0 }
 0x590   : > { %942 = vrot.lane.b32.xlu1 %v1178_v4, %s1589_s22 }
 0x5d4   : > { %v689_v6 = vpop.permute.xlu1 %688 }
 0x5d5   : > { %692 = vst.msk [vmem:[#allocation3] sm:$0xf] %vm691_vm6, %v689_v6 }
 0x5fa   : > { %v816_v7 = vpop.permute.xlu0 %815 }
 0x5fb   : > { %819 = vst.msk [vmem:[#allocation3] sm:$0xf] %vm818_vm7, %v816_v7 }
 0x602   : > { %v943_v9 = vpop.permute.xlu1 %942 }
 0x603   : > { %946 = vst.msk [vmem:[#allocation3] sm:$0xf] %vm945_vm8, %v943_v9 }
 0x60a   : > { %v947_v8 = vld [vmem:[#allocation3] sm:$0xf] }
 0x60b   : > { %1262 = vmatmul.mubr.msk.bf16.vlgmr.msra.gmra.mrb[16].mxu1 %vm342_vm0, %v947_v8 }
 0x6de   : > { %v1009_v11 = vpop.f32.mrb[16].mxu1 }
 0x6df   : > { %v1010_v12 = vadd.f32 %v1168_v10, %v1009_v11  ;;  %v1263_v13 = vpop.f32.mrb[17].mxu1 }
 0x6e0   : > { %v1012_v14 = vpop.f32.mrb[18].mxu1 }
 0x6e1   : > { %v1264_v15 = vpop.f32.mrb[19].mxu1  ;;  %1015 = vst.msk [vmem:[%s334_s8] sm:$0xff] %vm342_vm0, %v1010_v12 }
 0x6e2   : > { %1494 = shalt.err (!%p1491_p11)
}
 0x6e3   : > { %s1495_s20 = scalar_lea.hbm %s1925_s13, 128  ;;  %s1499_s21 = scalar_lea.hbm %s1982_s7, 256 }
 0x6e4   : > { %p1496_p0 = scmp.ne.s32.totalorder %s1925_s13, %s1495_s20  ;;  %p1500_p6 = scmp.lt.u32.totalorder %s1925_s13, %s1982_s7 }
 0x6e5   : > { %p1501_p7 = scmp.lt.u32.totalorder %s1499_s21, %s1495_s20  ;;  %p1503_p8 = scmp.lt.u32.totalorder %s1495_s20, %s1925_s13 }
 0x6e6   : > { %p1497_p4 = pnand %p1496_p0, %p2001_p2 }
 0x6e7   : > { %p1502_p12 = por %p1501_p7, %p1500_p6 }
 0x6e8   : > { %p1498_p13 = pneg %p1497_p4 }
 0x6e9   : > { %p1504_p1 = por %p1503_p8, %p1502_p12 }
 0x6eb   : > { %p1505_p10 = pnand %p1504_p1, %p1498_p13 }
 0x6ed   : > { %1508 = shalt.err (!%p1505_p10)
}
 0x6ee   : > { %1275 = dma.vmem_to_hbm [thread:$0]  (%p2001_p2), %s1927_s14, 128, %s1925_s13, %s1017_s27  }
 0x6ef PF: > { %s2002_s8 = sld [smem:[#allocation14_spill]]  ;;  %s2003_s9 = sld [smem:[#allocation15_spill]] }
 0x6f0   : > { %p2005_p5 = scmp.ge.s32.totalorder %s1567_s29, 2 }
 0x6f5   : > { %s1043_s11 = sand.u32 1, %s2002_s8   ;;  %p2004_p3 = scmp.ne.s32.totalorder %s2003_s9, 0 }
 0x6f6   : > { %s1044_s15 = scalar_lea.sflag [#allocation6], %s1043_s11 }
 0x6f7   : > { %p1289_p9 = pnand %p2005_p5, %p2004_p3 }
 0x6f9   : > { %1542 = dma.done.wait (!%p1289_p9), %s1044_s15, 128  }
 0x6fa   : > { %1544 = vsyncadd (!%p1289_p9), %s1044_s15, 4294967168  ;;  %s24_s29 = sadd.s32 1, %s1567_s29   ;;  %s2006_s24 = smov %s1551_s25 }
 0x6fb   : > { %p21_p11 = scmp.ge.s32.totalorder %s24_s29, 4   ;;  %s2007_s25 = smov %s1555_s26 }
 0x6fc   : > { %s2008_s26 = smov %s1774_s30  ;;  %s2009_s27 = smov %s1563_s28 }
 0x6fd   : > { %s2010_s28 = smov %s2012_s19  ;;  %23 = sbr.rel (!%p21_p11) target bundleno = 7 (0x7), region = 106 }
 0x704   :  { %1049 = vsyncpa [#allocation5], 1 }
 0x705   :  { %1051 = vsyncpa [#allocation5 + $0x1], 1 }
 0x706   :  { %1052 = vsyncpa [#allocation8], 1 }
 0x707   :  { %1053 = vsyncpa [#allocation6], 1 }
 0x708   :  { %1055 = vsyncpa [#allocation6 + $0x1], 1 }

</bundles_post_ra>
